<compile_context>
chip_gen: v5e
topology: v5e:2x2
jax: 0.10.0
libtpu: 0.0.40
codegen_flags: <defaults>
</compile_context>

<pallas_src>
import functools

import jax
import jax.numpy as jnp
from jax.experimental import pallas as pl
from jax.experimental.pallas import tpu as pltpu


# ---------------------------------------------------------------------------
# Small fused dense (transformer stand-in, token path) — single invocation
# ---------------------------------------------------------------------------

def _dense_kernel(x_ref, w_ref, b_ref, o_ref):
    y = jnp.dot(x_ref[...].astype(jnp.bfloat16), w_ref[...],
                preferred_element_type=jnp.float32) + b_ref[...]
    o_ref[...] = y.astype(o_ref.dtype)


def dense_small(x, w_bf16, b_f32):
    M, K = x.shape
    N = w_bf16.shape[1]
    return pl.pallas_call(
        _dense_kernel,
        out_shape=jax.ShapeDtypeStruct((M, N), jnp.float32),
        in_specs=[
            pl.BlockSpec((M, K), lambda: (0, 0)),
            pl.BlockSpec((K, N), lambda: (0, 0)),
            pl.BlockSpec((1, N), lambda: (0, 0)),
        ],
        out_specs=pl.BlockSpec((M, N), lambda: (0, 0)),
    )(x, w_bf16, b_f32)


# ---------------------------------------------------------------------------
# Fused (src + pos) -> ConvT(2,2) -> LayerNorm2d -> GELU -> ConvT(2,2) -> GELU
#   -> (hyper_in @ upscaled) contraction.
# Everything stays as matmuls / elementwise ops in (rows, cols) layout; the
# spatial 2x2x2x2 unshuffle is deferred to the tiny masks output outside.
# ---------------------------------------------------------------------------

def _upscale_masks_kernel(x_ref, p_ref, wf_ref, bf_ref, pavg_ref, lg_ref, lb_ref,
                          w2_ref, b2_ref, h_ref, o_ref, *, eps):
    # folded (src + pos) @ (W_src @ W_convT1) + bias   (first ConvTranspose2d)
    s = x_ref[0] + p_ref[0]                                         # bf16 add
    y = jnp.dot(s, wf_ref[...], preferred_element_type=jnp.float32) + bf_ref[...]
    # LayerNorm2d per (di,dj) sub-pixel group via one bf16 block-averaging matmul
    mu = jnp.dot(y.astype(jnp.bfloat16), pavg_ref[...],
                 preferred_element_type=jnp.float32)
    yc = y - mu
    var = jnp.dot((yc * yc).astype(jnp.bfloat16), pavg_ref[...],
                  preferred_element_type=jnp.float32)
    yn = yc * jax.lax.rsqrt(var + eps) * lg_ref[...] + lb_ref[...]
    # TODO(synk): torch nn.GELU is erf-exact; tanh approximation used here.
    yg = jax.nn.gelu(yn.astype(jnp.bfloat16), approximate=True)
    # second ConvTranspose2d(2,2) as block-diagonal matmul; cols=(di1,dj1,di2,dj2,c8)
    z = jnp.dot(yg, w2_ref[...], preferred_element_type=jnp.float32) + b2_ref[...]
    zg = jax.nn.gelu(z.astype(jnp.bfloat16), approximate=True)
    # masks contraction against block-diagonal hyper_in over the 16 sub-pixel slots
    o_ref[0] = jnp.dot(zg, h_ref[0],
                       preferred_element_type=jnp.float32).astype(o_ref.dtype)


def upscale_and_masks(src_rows, pe_rows, wfold, bfold, pavg, ln_g4, ln_b4,
                      w2bd, b2f, hyper_bd, eps=1e-6, tile_rows=1024):
    b, HW, C = src_rows.shape
    C4x4 = wfold.shape[1]
    OC = w2bd.shape[1]              # 16 * C8
    KH = hyper_bd.shape[1]          # 16 * C8
    TC = hyper_bd.shape[2]          # 16 * n_selected_tokens
    TMR = HW if HW <= tile_rows else tile_rows
    if pe_rows.shape[0] == 1:
        p_map = lambda n, m: (0, m, 0)      # broadcast image_pe over batch
    else:
        p_map = lambda n, m: (n, m, 0)
    return pl.pallas_call(
        functools.partial(_upscale_masks_kernel, eps=eps),
        out_shape=jax.ShapeDtypeStruct((b, HW, TC), jnp.bfloat16),
        grid=(b, pl.cdiv(HW, TMR)),
        in_specs=[
            pl.BlockSpec((1, TMR, C), lambda n, m: (n, m, 0)),
            pl.BlockSpec((1, TMR, C), p_map),
            pl.BlockSpec((C, C4x4), lambda n, m: (0, 0)),
            pl.BlockSpec((1, C4x4), lambda n, m: (0, 0)),
            pl.BlockSpec((C4x4, C4x4), lambda n, m: (0, 0)),
            pl.BlockSpec((1, C4x4), lambda n, m: (0, 0)),
            pl.BlockSpec((1, C4x4), lambda n, m: (0, 0)),
            pl.BlockSpec((C4x4, OC), lambda n, m: (0, 0)),
            pl.BlockSpec((1, OC), lambda n, m: (0, 0)),
            pl.BlockSpec((1, KH, TC), lambda n, m: (n, 0, 0)),
        ],
        out_specs=pl.BlockSpec((1, TMR, TC), lambda n, m: (n, m, 0)),
        compiler_params=pltpu.CompilerParams(
            dimension_semantics=("parallel", "parallel")),
    )(src_rows, pe_rows, wfold, bfold, pavg, ln_g4, ln_b4, w2bd, b2f, hyper_bd)


# ---------------------------------------------------------------------------
# Hypernetwork MLPs (selected mask tokens, 3 layers each) — single invocation
# ---------------------------------------------------------------------------

def _hyper_mlp_kernel(x_ref, w1_ref, b1_ref, w2_ref, b2_ref, w3_ref, b3_ref,
                      o_ref, *, n_tok):
    for t in range(n_tok):                    # statically unrolled, all in VMEM
        x = x_ref[t].astype(jnp.bfloat16)
        h = jnp.dot(x, w1_ref[t], preferred_element_type=jnp.float32) + b1_ref[t]
        h = jnp.maximum(h, 0.0).astype(jnp.bfloat16)
        h = jnp.dot(h, w2_ref[t], preferred_element_type=jnp.float32) + b2_ref[t]
        h = jnp.maximum(h, 0.0).astype(jnp.bfloat16)
        o_ref[t] = (jnp.dot(h, w3_ref[t], preferred_element_type=jnp.float32)
                    + b3_ref[t]).astype(o_ref.dtype)


def hyper_mlps(xT, w1, b1, w2, b2, w3, b3):
    T, b, C = xT.shape
    C8 = w3.shape[2]
    return pl.pallas_call(
        functools.partial(_hyper_mlp_kernel, n_tok=T),
        out_shape=jax.ShapeDtypeStruct((T, b, C8), jnp.float32),
        in_specs=[
            pl.BlockSpec((T, b, C), lambda: (0, 0, 0)),
            pl.BlockSpec((T, C, C), lambda: (0, 0, 0)),
            pl.BlockSpec((T, 1, C), lambda: (0, 0, 0)),
            pl.BlockSpec((T, C, C), lambda: (0, 0, 0)),
            pl.BlockSpec((T, 1, C), lambda: (0, 0, 0)),
            pl.BlockSpec((T, C, C8), lambda: (0, 0, 0)),
            pl.BlockSpec((T, 1, C8), lambda: (0, 0, 0)),
        ],
        out_specs=pl.BlockSpec((T, b, C8), lambda: (0, 0, 0)),
    )(xT, w1, b1, w2, b2, w3, b3)


# ---------------------------------------------------------------------------
# IoU prediction head (3-layer MLP) — single invocation
# ---------------------------------------------------------------------------

def _iou_mlp_kernel(x_ref, w1_ref, b1_ref, w2_ref, b2_ref, w3_ref, b3_ref, o_ref):
    x = x_ref[...].astype(jnp.bfloat16)
    h = jnp.dot(x, w1_ref[...], preferred_element_type=jnp.float32) + b1_ref[...]
    h = jnp.maximum(h, 0.0).astype(jnp.bfloat16)
    h = jnp.dot(h, w2_ref[...], preferred_element_type=jnp.float32) + b2_ref[...]
    h = jnp.maximum(h, 0.0).astype(jnp.bfloat16)
    o_ref[...] = (jnp.dot(h, w3_ref[...], preferred_element_type=jnp.float32)
                  + b3_ref[...]).astype(o_ref.dtype)


def iou_head(x, w1, b1, w2, b2, w3, b3):
    M, C = x.shape
    Hh = w1.shape[1]
    T = w3.shape[1]
    return pl.pallas_call(
        _iou_mlp_kernel,
        out_shape=jax.ShapeDtypeStruct((M, T), jnp.float32),
        in_specs=[
            pl.BlockSpec((M, C), lambda: (0, 0)),
            pl.BlockSpec((C, Hh), lambda: (0, 0)),
            pl.BlockSpec((1, Hh), lambda: (0, 0)),
            pl.BlockSpec((Hh, Hh), lambda: (0, 0)),
            pl.BlockSpec((1, Hh), lambda: (0, 0)),
            pl.BlockSpec((Hh, T), lambda: (0, 0)),
            pl.BlockSpec((1, T), lambda: (0, 0)),
        ],
        out_specs=pl.BlockSpec((M, T), lambda: (0, 0)),
    )(x, w1, b1, w2, b2, w3, b3)


# ---------------------------------------------------------------------------
# Parameters (deterministic synthetic init, torch-equivalent shapes)
# ---------------------------------------------------------------------------

def init_params(key, transformer_dim, num_multimask_outputs=3,
                iou_head_hidden_dim=256):
    C = transformer_dim
    T = num_multimask_outputs + 1
    keys = iter(jax.random.split(key, 32))

    def nrm(shape, scale=0.02):
        return (scale * jax.random.normal(next(keys), shape)).astype(jnp.float32)

    return {
        "iou_token": nrm((1, C)),
        "mask_tokens": nrm((T, C)),
        # transformer stand-in (see TODO in forward)
        "t_w_tok": nrm((C, C)), "t_b_tok": nrm((C,)),
        "t_w_src": nrm((C, C)), "t_b_src": nrm((C,)),
        # output_upscaling (PyTorch ConvTranspose2d weight layout (Ci,Co,2,2))
        "up1_w": nrm((C, C // 4, 2, 2)), "up1_b": nrm((C // 4,)),
        "ln_g": jnp.ones((C // 4,), jnp.float32),
        "ln_b": jnp.zeros((C // 4,), jnp.float32),
        "up2_w": nrm((C // 4, C // 8, 2, 2)), "up2_b": nrm((C // 8,)),
        # iou prediction head (depth 3)
        "iou_w1": nrm((C, iou_head_hidden_dim)), "iou_b1": nrm((iou_head_hidden_dim,)),
        "iou_w2": nrm((iou_head_hidden_dim, iou_head_hidden_dim)),
        "iou_b2": nrm((iou_head_hidden_dim,)),
        "iou_w3": nrm((iou_head_hidden_dim, T)), "iou_b3": nrm((T,)),
        # hypernetwork MLPs stacked over the T mask tokens
        "hyp_w1": nrm((T, C, C)), "hyp_b1": nrm((T, C)),
        "hyp_w2": nrm((T, C, C)), "hyp_b2": nrm((T, C)),
        "hyp_w3": nrm((T, C, C // 8)), "hyp_b3": nrm((T, C // 8)),
    }


def prepare_params(params):
    """One-time weight prep: expand conv-transposes to matmuls, fold the linear
    transformer-stand-in src branch, build the LayerNorm block-averaging matrix
    and pre-cast every matmul weight to bf16 / every bias to a (1, N) fp32 row."""
    C = params["t_w_tok"].shape[0]
    C4, C8 = C // 4, C // 8
    T = params["mask_tokens"].shape[0]

    wm1 = jnp.transpose(params["up1_w"], (0, 2, 3, 1)).reshape(C, 4 * C4)
    wm2 = jnp.transpose(params["up2_w"], (0, 2, 3, 1)).reshape(C4, 4 * C8)
    wfold = params["t_w_src"] @ wm1                       # fold stand-in src dense
    bfold = params["t_b_src"] @ wm1 + jnp.tile(params["up1_b"], 4)
    w2bd = jnp.kron(jnp.eye(4, dtype=jnp.float32), wm2)   # (4*C4, 16*C8)
    b2f = jnp.tile(params["up2_b"], 16)
    # block-averaging matrix for LayerNorm2d over each (di,dj) sub-pixel group;
    # 1/C4 is exact in bf16 for power-of-two C4
    pavg = jnp.kron(jnp.eye(4, dtype=jnp.float32),
                    jnp.full((C4, C4), 1.0 / C4, jnp.float32))

    return {
        "iou_token": params["iou_token"],
        "mask_tokens": params["mask_tokens"],
        "t_w_tok": params["t_w_tok"].astype(jnp.bfloat16),
        "t_b_tok": params["t_b_tok"].reshape(1, C).astype(jnp.float32),
        "wfold": wfold.astype(jnp.bfloat16),
        "bfold": bfold.reshape(1, 4 * C4).astype(jnp.float32),
        "pavg": pavg.astype(jnp.bfloat16),
        "ln_g4": jnp.tile(params["ln_g"], 4).reshape(1, 4 * C4).astype(jnp.float32),
        "ln_b4": jnp.tile(params["ln_b"], 4).reshape(1, 4 * C4).astype(jnp.float32),
        "w2bd": w2bd.astype(jnp.bfloat16),
        "b2f": b2f.reshape(1, 16 * C8).astype(jnp.float32),
        "hyp_w1": params["hyp_w1"].astype(jnp.bfloat16),
        "hyp_b1": params["hyp_b1"].reshape(T, 1, C).astype(jnp.float32),
        "hyp_w2": params["hyp_w2"].astype(jnp.bfloat16),
        "hyp_b2": params["hyp_b2"].reshape(T, 1, C).astype(jnp.float32),
        "hyp_w3": params["hyp_w3"].astype(jnp.bfloat16),
        "hyp_b3": params["hyp_b3"].reshape(T, 1, C8).astype(jnp.float32),
        "iou_w1": params["iou_w1"].astype(jnp.bfloat16),
        "iou_b1": params["iou_b1"].reshape(1, -1).astype(jnp.float32),
        "iou_w2": params["iou_w2"].astype(jnp.bfloat16),
        "iou_b2": params["iou_b2"].reshape(1, -1).astype(jnp.float32),
        "iou_w3": params["iou_w3"].astype(jnp.bfloat16),
        "iou_b3": params["iou_b3"].reshape(1, -1).astype(jnp.float32),
    }


# ---------------------------------------------------------------------------
# MaskDecoder forward
# ---------------------------------------------------------------------------

def mask_decoder_forward(prep, image_embeddings, image_pe, mix_embeddings,
                         multimask_output):
    B, C, H, W = image_embeddings.shape
    T = prep["mask_tokens"].shape[0]
    C8 = C // 8
    HW = H * W

    # tokens = cat([iou_token, mask_tokens]) expanded over batch + prompts
    output_tokens = jnp.concatenate([prep["iou_token"], prep["mask_tokens"]], axis=0)
    output_tokens = jnp.broadcast_to(output_tokens[None], (B, T + 1, C))
    tokens = jnp.concatenate([output_tokens, mix_embeddings.astype(jnp.float32)],
                             axis=1)
    bt, ntok, _ = tokens.shape

    # src / pos in (batch, pixels, channels) row layout; image_pe batch
    # broadcast handled in the fused kernel's index_map (no repeat materialized)
    src_rows = jnp.transpose(image_embeddings, (0, 2, 3, 1)).reshape(B, HW, C)
    if B != bt:  # matches torch repeat_interleave fallback (unused in practice)
        src_rows = jnp.repeat(src_rows, bt, axis=0)
    b = src_rows.shape[0]
    pe_rows = jnp.transpose(image_pe, (0, 2, 3, 1)).reshape(image_pe.shape[0], HW, C)
    if pe_rows.shape[0] not in (1, b):
        pe_rows = jnp.repeat(pe_rows, bt, axis=0)
    src_rows = src_rows.astype(jnp.bfloat16)
    pe_rows = pe_rows.astype(jnp.bfloat16)

    # ----- transformer -----
    # TODO(synk): the real `transformer` is an injected nn.Module (e.g. SAM's
    # TwoWayTransformer); a deterministic linear stand-in is used here.  Its
    # image branch ((src+pos) @ W_src + b_src) is folded into the first
    # ConvTranspose matmul of the fused upscale kernel, so the (b, HW, C)
    # src tensor never round-trips HBM.
    hs = dense_small(tokens.reshape(b * ntok, C), prep["t_w_tok"],
                     prep["t_b_tok"]).reshape(b, ntok, C)

    iou_token_out = hs[:, 0, :]

    # static token selection: multimask -> mask tokens 1..T-1, else token 0 only
    t0, t1 = (1, T) if multimask_output else (0, 1)
    n_sel = t1 - t0
    mask_tokens_sel = hs[:, 1 + t0:1 + t1, :]                       # (b, n_sel, C)

    # ----- hypernetwork MLPs (selected tokens only, single fused call) -----
    xT = jnp.transpose(mask_tokens_sel, (1, 0, 2))                  # (n_sel, b, C)
    hyper = hyper_mlps(xT,
                       prep["hyp_w1"][t0:t1], prep["hyp_b1"][t0:t1],
                       prep["hyp_w2"][t0:t1], prep["hyp_b2"][t0:t1],
                       prep["hyp_w3"][t0:t1], prep["hyp_b3"][t0:t1])  # (n_sel,b,C8)

    # block-diagonal expansion of hyper_in over the 16 sub-pixel slots so the
    # masks contraction is a plain matmul against the fused upscale output
    hyperT = jnp.transpose(hyper, (1, 2, 0))                        # (b, C8, n_sel)
    eye16 = jnp.eye(16, dtype=jnp.float32)
    hyper_bd = jnp.einsum("sz,nct->nsczt", eye16, hyperT).reshape(
        b, 16 * C8, 16 * n_sel).astype(jnp.bfloat16)

    # ----- fused (src+pos) -> convT -> LN -> GELU -> convT -> GELU -> masks -----
    masks_cols = upscale_and_masks(src_rows, pe_rows, prep["wfold"], prep["bfold"],
                                   prep["pavg"], prep["ln_g4"], prep["ln_b4"],
                                   prep["w2bd"], prep["b2f"],
                                   hyper_bd)                        # (b, HW, 16*n_sel)

    # ----- iou prediction head -----
    iou_pred = iou_head(iou_token_out, prep["iou_w1"], prep["iou_b1"],
                        prep["iou_w2"], prep["iou_b2"],
                        prep["iou_w3"], prep["iou_b3"])[:, t0:t1]   # (b, n_sel)

    # ----- undo the 2x2x2x2 pixel shuffle on the small masks output -----
    m = masks_cols.reshape(b, H, W, 2, 2, 2, 2, n_sel)
    m = jnp.transpose(m, (0, 7, 1, 3, 5, 2, 4, 6))
    masks = m.reshape(b, n_sel, 4 * H, 4 * W).astype(jnp.float32)
    return masks, iou_pred


# ---------------------------------------------------------------------------

if __name__ == "__main__":
    transformer_dim = 32          # C (divisible by 8); real SAM uses 256
    B, H, W = 2, 8, 8
    num_multimask_outputs = 3
    num_prompt_tokens = 4

    root = jax.random.PRNGKey(0)
    kp, k1, k2, k3 = jax.random.split(root, 4)
    params = init_params(kp, transformer_dim, num_multimask_outputs)
    prep = prepare_params(params)     # one-time weight expansion / bf16 cast

    image_embeddings = jax.random.normal(k1, (B, transformer_dim, H, W), jnp.float32)
    image_pe = jax.random.normal(k2, (1, transformer_dim, H, W), jnp.float32)
    mix_embeddings = jax.random.normal(k3, (B, num_prompt_tokens, transformer_dim),
                                       jnp.float32)

    fwd = jax.jit(functools.partial(mask_decoder_forward, multimask_output=True))
    masks, iou_pred = fwd(prep, image_embeddings, image_pe, mix_embeddings)
    jax.block_until_ready((masks, iou_pred))

    assert masks.shape == (B, num_multimask_outputs, 4 * H, 4 * W), masks.shape
    assert iou_pred.shape == (B, num_multimask_outputs), iou_pred.shape
    print("KERNEL_OK")
</pallas_src>

<mosaic_0001>
module attributes {stable_mosaic.version = 11 : i64} {
  func.func @_dense_kernel(%arg0: memref<18x32xf32, #tpu.memory_space<vmem>>, %arg1: memref<32x32xbf16, #tpu.memory_space<vmem>>, %arg2: memref<1x32xf32, #tpu.memory_space<vmem>>, %arg3: memref<18x32xf32, #tpu.memory_space<vmem>>) attributes {dimension_semantics = [], scalar_prefetch = 0 : i64, scratch_operands = 0 : i64, tpu.core_type = #tpu.core_type<tc>} {
    %c0 = arith.constant 0 : index
    %c0_0 = arith.constant 0 : index
    %0 = vector.load %arg0[%c0, %c0_0] : memref<18x32xf32, #tpu.memory_space<vmem>>, vector<18x32xf32>
    %1 = arith.truncf %0 : vector<18x32xf32> to vector<18x32xbf16>
    %c0_1 = arith.constant 0 : index
    %c0_2 = arith.constant 0 : index
    %2 = vector.load %arg1[%c0_1, %c0_2] : memref<32x32xbf16, #tpu.memory_space<vmem>>, vector<32x32xbf16>
    %cst = arith.constant dense<0.000000e+00> : vector<18x32xf32>
    %3 = tpu.matmul %1, %2, %cst {dimension_numbers = #tpu.dot_dimension_numbers<[1], [0], [0], [1], [0, 0, 1, 1], [], []>} : vector<18x32xbf16>, vector<32x32xbf16>, vector<18x32xf32> -> vector<18x32xf32>
    %c0_3 = arith.constant 0 : index
    %c0_4 = arith.constant 0 : index
    %4 = vector.load %arg2[%c0_3, %c0_4] : memref<1x32xf32, #tpu.memory_space<vmem>>, vector<1x32xf32>
    %5 = vector.broadcast %4 : vector<1x32xf32> to vector<18x32xf32>
    %6 = arith.addf %3, %5 : vector<18x32xf32>
    %c0_5 = arith.constant 0 : index
    %c0_6 = arith.constant 0 : index
    %7 = vector.load %arg3[%c0_5, %c0_6] : memref<18x32xf32, #tpu.memory_space<vmem>>, vector<18x32xf32>
    tpu.vector_store %arg3[%c0_5, %c0_6], %6 {strides = array<i32>} : memref<18x32xf32, #tpu.memory_space<vmem>>, vector<18x32xf32>,
    return
  }
}

module attributes {stable_mosaic.version = 11 : i64} {
  func.func @_hyper_mlp_kernel(%arg0: memref<3x2x32xf32, #tpu.memory_space<vmem>>, %arg1: memref<3x32x32xbf16, #tpu.memory_space<vmem>>, %arg2: memref<3x1x32xf32, #tpu.memory_space<vmem>>, %arg3: memref<3x32x32xbf16, #tpu.memory_space<vmem>>, %arg4: memref<3x1x32xf32, #tpu.memory_space<vmem>>, %arg5: memref<3x32x4xbf16, #tpu.memory_space<vmem>>, %arg6: memref<3x1x4xf32, #tpu.memory_space<vmem>>, %arg7: memref<3x2x4xf32, #tpu.memory_space<vmem>>) attributes {dimension_semantics = [], scalar_prefetch = 0 : i64, scratch_operands = 0 : i64, tpu.core_type = #tpu.core_type<tc>} {
    %c0 = arith.constant 0 : index
    %c0_0 = arith.constant 0 : index
    %c0_1 = arith.constant 0 : index
    %0 = vector.load %arg0[%c0, %c0_0, %c0_1] : memref<3x2x32xf32, #tpu.memory_space<vmem>>, vector<1x2x32xf32>
    %1 = vector.shape_cast %0 : vector<1x2x32xf32> to vector<2x32xf32>
    %2 = arith.truncf %1 : vector<2x32xf32> to vector<2x32xbf16>
    %c0_2 = arith.constant 0 : index
    %c0_3 = arith.constant 0 : index
    %c0_4 = arith.constant 0 : index
    %3 = vector.load %arg1[%c0_2, %c0_3, %c0_4] : memref<3x32x32xbf16, #tpu.memory_space<vmem>>, vector<1x32x32xbf16>
    %4 = vector.shape_cast %3 : vector<1x32x32xbf16> to vector<32x32xbf16>
    %cst = arith.constant dense<0.000000e+00> : vector<2x32xf32>
    %5 = tpu.matmul %2, %4, %cst {dimension_numbers = #tpu.dot_dimension_numbers<[1], [0], [0], [1], [0, 0, 1, 1], [], []>} : vector<2x32xbf16>, vector<32x32xbf16>, vector<2x32xf32> -> vector<2x32xf32>
    %c0_5 = arith.constant 0 : index
    %c0_6 = arith.constant 0 : index
    %c0_7 = arith.constant 0 : index
    %6 = vector.load %arg2[%c0_5, %c0_6, %c0_7] : memref<3x1x32xf32, #tpu.memory_space<vmem>>, vector<1x1x32xf32>
    %7 = vector.shape_cast %6 : vector<1x1x32xf32> to vector<1x32xf32>
    %8 = vector.broadcast %7 : vector<1x32xf32> to vector<2x32xf32>
    %9 = arith.addf %5, %8 : vector<2x32xf32>
    %cst_8 = arith.constant 0.000000e+00 : f32
    %10 = vector.broadcast %cst_8 : f32 to vector<2x32xf32>
    %11 = arith.maximumf %9, %10 : vector<2x32xf32>
    %12 = arith.truncf %11 : vector<2x32xf32> to vector<2x32xbf16>
    %c0_9 = arith.constant 0 : index
    %c0_10 = arith.constant 0 : index
    %c0_11 = arith.constant 0 : index
    %13 = vector.load %arg3[%c0_9, %c0_10, %c0_11] : memref<3x32x32xbf16, #tpu.memory_space<vmem>>, vector<1x32x32xbf16>
    %14 = vector.shape_cast %13 : vector<1x32x32xbf16> to vector<32x32xbf16>
    %cst_12 = arith.constant dense<0.000000e+00> : vector<2x32xf32>
    %15 = tpu.matmul %12, %14, %cst_12 {dimension_numbers = #tpu.dot_dimension_numbers<[1], [0], [0], [1], [0, 0, 1, 1], [], []>} : vector<2x32xbf16>, vector<32x32xbf16>, vector<2x32xf32> -> vector<2x32xf32>
    %c0_13 = arith.constant 0 : index
    %c0_14 = arith.constant 0 : index
    %c0_15 = arith.constant 0 : index
    %16 = vector.load %arg4[%c0_13, %c0_14, %c0_15] : memref<3x1x32xf32, #tpu.memory_space<vmem>>, vector<1x1x32xf32>
    %17 = vector.shape_cast %16 : vector<1x1x32xf32> to vector<1x32xf32>
    %18 = vector.broadcast %17 : vector<1x32xf32> to vector<2x32xf32>
    %19 = arith.addf %15, %18 : vector<2x32xf32>
    %cst_16 = arith.constant 0.000000e+00 : f32
    %20 = vector.broadcast %cst_16 : f32 to vector<2x32xf32>
    %21 = arith.maximumf %19, %20 : vector<2x32xf32>
    %22 = arith.truncf %21 : vector<2x32xf32> to vector<2x32xbf16>
    %c0_17 = arith.constant 0 : index
    %c0_18 = arith.constant 0 : index
    %c0_19 = arith.constant 0 : index
    %23 = vector.load %arg5[%c0_17, %c0_18, %c0_19] : memref<3x32x4xbf16, #tpu.memory_space<vmem>>, vector<1x32x4xbf16>
    %24 = vector.shape_cast %23 : vector<1x32x4xbf16> to vector<32x4xbf16>
    %cst_20 = arith.constant dense<0.000000e+00> : vector<2x4xf32>
    %25 = tpu.matmul %22, %24, %cst_20 {dimension_numbers = #tpu.dot_dimension_numbers<[1], [0], [0], [1], [0, 0, 1, 1], [], []>} : vector<2x32xbf16>, vector<32x4xbf16>, vector<2x4xf32> -> vector<2x4xf32>
    %c0_21 = arith.constant 0 : index
    %c0_22 = arith.constant 0 : index
    %c0_23 = arith.constant 0 : index
    %26 = vector.load %arg6[%c0_21, %c0_22, %c0_23] : memref<3x1x4xf32, #tpu.memory_space<vmem>>, vector<1x1x4xf32>
    %27 = vector.shape_cast %26 : vector<1x1x4xf32> to vector<1x4xf32>
    %28 = vector.broadcast %27 : vector<1x4xf32> to vector<2x4xf32>
    %29 = arith.addf %25, %28 : vector<2x4xf32>
    %c0_24 = arith.constant 0 : index
    %c0_25 = arith.constant 0 : index
    %c0_26 = arith.constant 0 : index
    %30 = vector.load %arg7[%c0_24, %c0_25, %c0_26] : memref<3x2x4xf32, #tpu.memory_space<vmem>>, vector<1x2x4xf32>
    %31 = vector.shape_cast %30 : vector<1x2x4xf32> to vector<2x4xf32>
    %32 = vector.shape_cast %29 : vector<2x4xf32> to vector<1x2x4xf32>
    tpu.vector_store %arg7[%c0_24, %c0_25, %c0_26], %32 {strides = array<i32>} : memref<3x2x4xf32, #tpu.memory_space<vmem>>, vector<1x2x4xf32>,
    %c1 = arith.constant 1 : index
    %c0_27 = arith.constant 0 : index
    %c0_28 = arith.constant 0 : index
    %33 = vector.load %arg0[%c1, %c0_27, %c0_28] : memref<3x2x32xf32, #tpu.memory_space<vmem>>, vector<1x2x32xf32>
    %34 = vector.shape_cast %33 : vector<1x2x32xf32> to vector<2x32xf32>
    %35 = arith.truncf %34 : vector<2x32xf32> to vector<2x32xbf16>
    %c1_29 = arith.constant 1 : index
    %c0_30 = arith.constant 0 : index
    %c0_31 = arith.constant 0 : index
    %36 = vector.load %arg1[%c1_29, %c0_30, %c0_31] : memref<3x32x32xbf16, #tpu.memory_space<vmem>>, vector<1x32x32xbf16>
    %37 = vector.shape_cast %36 : vector<1x32x32xbf16> to vector<32x32xbf16>
    %cst_32 = arith.constant dense<0.000000e+00> : vector<2x32xf32>
    %38 = tpu.matmul %35, %37, %cst_32 {dimension_numbers = #tpu.dot_dimension_numbers<[1], [0], [0], [1], [0, 0, 1, 1], [], []>} : vector<2x32xbf16>, vector<32x32xbf16>, vector<2x32xf32> -> vector<2x32xf32>
    %c1_33 = arith.constant 1 : index
    %c0_34 = arith.constant 0 : index
    %c0_35 = arith.constant 0 : index
    %39 = vector.load %arg2[%c1_33, %c0_34, %c0_35] : memref<3x1x32xf32, #tpu.memory_space<vmem>>, vector<1x1x32xf32>
    %40 = vector.shape_cast %39 : vector<1x1x32xf32> to vector<1x32xf32>
    %41 = vector.broadcast %40 : vector<1x32xf32> to vector<2x32xf32>
    %42 = arith.addf %38, %41 : vector<2x32xf32>
    %cst_36 = arith.constant 0.000000e+00 : f32
    %43 = vector.broadcast %cst_36 : f32 to vector<2x32xf32>
    %44 = arith.maximumf %42, %43 : vector<2x32xf32>
    %45 = arith.truncf %44 : vector<2x32xf32> to vector<2x32xbf16>
    %c1_37 = arith.constant 1 : index
    %c0_38 = arith.constant 0 : index
    %c0_39 = arith.constant 0 : index
    %46 = vector.load %arg3[%c1_37, %c0_38, %c0_39] : memref<3x32x32xbf16, #tpu.memory_space<vmem>>, vector<1x32x32xbf16>
    %47 = vector.shape_cast %46 : vector<1x32x32xbf16> to vector<32x32xbf16>
    %cst_40 = arith.constant dense<0.000000e+00> : vector<2x32xf32>
    %48 = tpu.matmul %45, %47, %cst_40 {dimension_numbers = #tpu.dot_dimension_numbers<[1], [0], [0], [1], [0, 0, 1, 1], [], []>} : vector<2x32xbf16>, vector<32x32xbf16>, vector<2x32xf32> -> vector<2x32xf32>
    %c1_41 = arith.constant 1 : index
    %c0_42 = arith.constant 0 : index
    %c0_43 = arith.constant 0 : index
    %49 = vector.load %arg4[%c1_41, %c0_42, %c0_43] : memref<3x1x32xf32, #tpu.memory_space<vmem>>, vector<1x1x32xf32>
    %50 = vector.shape_cast %49 : vector<1x1x32xf32> to vector<1x32xf32>
    %51 = vector.broadcast %50 : vector<1x32xf32> to vector<2x32xf32>
    %52 = arith.addf %48, %51 : vector<2x32xf32>
    %cst_44 = arith.constant 0.000000e+00 : f32
    %53 = vector.broadcast %cst_44 : f32 to vector<2x32xf32>
    %54 = arith.maximumf %52, %53 : vector<2x32xf32>
    %55 = arith.truncf %54 : vector<2x32xf32> to vector<2x32xbf16>
    %c1_45 = arith.constant 1 : index
    %c0_46 = arith.constant 0 : index
    %c0_47 = arith.constant 0 : index
    %56 = vector.load %arg5[%c1_45, %c0_46, %c0_47] : memref<3x32x4xbf16, #tpu.memory_space<vmem>>, vector<1x32x4xbf16>
    %57 = vector.shape_cast %56 : vector<1x32x4xbf16> to vector<32x4xbf16>
    %cst_48 = arith.constant dense<0.000000e+00> : vector<2x4xf32>
    %58 = tpu.matmul %55, %57, %cst_48 {dimension_numbers = #tpu.dot_dimension_numbers<[1], [0], [0], [1], [0, 0, 1, 1], [], []>} : vector<2x32xbf16>, vector<32x4xbf16>, vector<2x4xf32> -> vector<2x4xf32>
    %c1_49 = arith.constant 1 : index
    %c0_50 = arith.constant 0 : index
    %c0_51 = arith.constant 0 : index
    %59 = vector.load %arg6[%c1_49, %c0_50, %c0_51] : memref<3x1x4xf32, #tpu.memory_space<vmem>>, vector<1x1x4xf32>
    %60 = vector.shape_cast %59 : vector<1x1x4xf32> to vector<1x4xf32>
    %61 = vector.broadcast %60 : vector<1x4xf32> to vector<2x4xf32>
    %62 = arith.addf %58, %61 : vector<2x4xf32>
    %c1_52 = arith.constant 1 : index
    %c0_53 = arith.constant 0 : index
    %c0_54 = arith.constant 0 : index
    %63 = vector.load %arg7[%c1_52, %c0_53, %c0_54] : memref<3x2x4xf32, #tpu.memory_space<vmem>>, vector<1x2x4xf32>
    %64 = vector.shape_cast %63 : vector<1x2x4xf32> to vector<2x4xf32>
    %65 = vector.shape_cast %62 : vector<2x4xf32> to vector<1x2x4xf32>
    tpu.vector_store %arg7[%c1_52, %c0_53, %c0_54], %65 {strides = array<i32>} : memref<3x2x4xf32, #tpu.memory_space<vmem>>, vector<1x2x4xf32>,
    %c2 = arith.constant 2 : index
    %c0_55 = arith.constant 0 : index
    %c0_56 = arith.constant 0 : index
    %66 = vector.load %arg0[%c2, %c0_55, %c0_56] : memref<3x2x32xf32, #tpu.memory_space<vmem>>, vector<1x2x32xf32>
    %67 = vector.shape_cast %66 : vector<1x2x32xf32> to vector<2x32xf32>
    %68 = arith.truncf %67 : vector<2x32xf32> to vector<2x32xbf16>
    %c2_57 = arith.constant 2 : index
    %c0_58 = arith.constant 0 : index
    %c0_59 = arith.constant 0 : index
    %69 = vector.load %arg1[%c2_57, %c0_58, %c0_59] : memref<3x32x32xbf16, #tpu.memory_space<vmem>>, vector<1x32x32xbf16>
    %70 = vector.shape_cast %69 : vector<1x32x32xbf16> to vector<32x32xbf16>
    %cst_60 = arith.constant dense<0.000000e+00> : vector<2x32xf32>
    %71 = tpu.matmul %68, %70, %cst_60 {dimension_numbers = #tpu.dot_dimension_numbers<[1], [0], [0], [1], [0, 0, 1, 1], [], []>} : vector<2x32xbf16>, vector<32x32xbf16>, vector<2x32xf32> -> vector<2x32xf32>
    %c2_61 = arith.constant 2 : index
    %c0_62 = arith.constant 0 : index
    %c0_63 = arith.constant 0 : index
    %72 = vector.load %arg2[%c2_61, %c0_62, %c0_63] : memref<3x1x32xf32, #tpu.memory_space<vmem>>, vector<1x1x32xf32>
    %73 = vector.shape_cast %72 : vector<1x1x32xf32> to vector<1x32xf32>
    %74 = vector.broadcast %73 : vector<1x32xf32> to vector<2x32xf32>
    %75 = arith.addf %71, %74 : vector<2x32xf32>
    %cst_64 = arith.constant 0.000000e+00 : f32
    %76 = vector.broadcast %cst_64 : f32 to vector<2x32xf32>
    %77 = arith.maximumf %75, %76 : vector<2x32xf32>
    %78 = arith.truncf %77 : vector<2x32xf32> to vector<2x32xbf16>
    %c2_65 = arith.constant 2 : index
    %c0_66 = arith.constant 0 : index
    %c0_67 = arith.constant 0 : index
    %79 = vector.load %arg3[%c2_65, %c0_66, %c0_67] : memref<3x32x32xbf16, #tpu.memory_space<vmem>>, vector<1x32x32xbf16>
    %80 = vector.shape_cast %79 : vector<1x32x32xbf16> to vector<32x32xbf16>
    %cst_68 = arith.constant dense<0.000000e+00> : vector<2x32xf32>
    %81 = tpu.matmul %78, %80, %cst_68 {dimension_numbers = #tpu.dot_dimension_numbers<[1], [0], [0], [1], [0, 0, 1, 1], [], []>} : vector<2x32xbf16>, vector<32x32xbf16>, vector<2x32xf32> -> vector<2x32xf32>
    %c2_69 = arith.constant 2 : index
    %c0_70 = arith.constant 0 : index
    %c0_71 = arith.constant 0 : index
    %82 = vector.load %arg4[%c2_69, %c0_70, %c0_71] : memref<3x1x32xf32, #tpu.memory_space<vmem>>, vector<1x1x32xf32>
    %83 = vector.shape_cast %82 : vector<1x1x32xf32> to vector<1x32xf32>
    %84 = vector.broadcast %83 : vector<1x32xf32> to vector<2x32xf32>
    %85 = arith.addf %81, %84 : vector<2x32xf32>
    %cst_72 = arith.constant 0.000000e+00 : f32
    %86 = vector.broadcast %cst_72 : f32 to vector<2x32xf32>
    %87 = arith.maximumf %85, %86 : vector<2x32xf32>
    %88 = arith.truncf %87 : vector<2x32xf32> to vector<2x32xbf16>
    %c2_73 = arith.constant 2 : index
    %c0_74 = arith.constant 0 : index
    %c0_75 = arith.constant 0 : index
    %89 = vector.load %arg5[%c2_73, %c0_74, %c0_75] : memref<3x32x4xbf16, #tpu.memory_space<vmem>>, vector<1x32x4xbf16>
    %90 = vector.shape_cast %89 : vector<1x32x4xbf16> to vector<32x4xbf16>
    %cst_76 = arith.constant dense<0.000000e+00> : vector<2x4xf32>
    %91 = tpu.matmul %88, %90, %cst_76 {dimension_numbers = #tpu.dot_dimension_numbers<[1], [0], [0], [1], [0, 0, 1, 1], [], []>} : vector<2x32xbf16>, vector<32x4xbf16>, vector<2x4xf32> -> vector<2x4xf32>
    %c2_77 = arith.constant 2 : index
    %c0_78 = arith.constant 0 : index
    %c0_79 = arith.constant 0 : index
    %92 = vector.load %arg6[%c2_77, %c0_78, %c0_79] : memref<3x1x4xf32, #tpu.memory_space<vmem>>, vector<1x1x4xf32>
    %93 = vector.shape_cast %92 : vector<1x1x4xf32> to vector<1x4xf32>
    %94 = vector.broadcast %93 : vector<1x4xf32> to vector<2x4xf32>
    %95 = arith.addf %91, %94 : vector<2x4xf32>
    %c2_80 = arith.constant 2 : index
    %c0_81 = arith.constant 0 : index
    %c0_82 = arith.constant 0 : index
    %96 = vector.load %arg7[%c2_80, %c0_81, %c0_82] : memref<3x2x4xf32, #tpu.memory_space<vmem>>, vector<1x2x4xf32>
    %97 = vector.shape_cast %96 : vector<1x2x4xf32> to vector<2x4xf32>
    %98 = vector.shape_cast %95 : vector<2x4xf32> to vector<1x2x4xf32>
    tpu.vector_store %arg7[%c2_80, %c0_81, %c0_82], %98 {strides = array<i32>} : memref<3x2x4xf32, #tpu.memory_space<vmem>>, vector<1x2x4xf32>,
    return
  }
}

module attributes {stable_mosaic.version = 11 : i64} {
  func.func @_iou_mlp_kernel(%arg0: memref<2x32xf32, #tpu.memory_space<vmem>>, %arg1: memref<32x256xbf16, #tpu.memory_space<vmem>>, %arg2: memref<1x256xf32, #tpu.memory_space<vmem>>, %arg3: memref<256x256xbf16, #tpu.memory_space<vmem>>, %arg4: memref<1x256xf32, #tpu.memory_space<vmem>>, %arg5: memref<256x4xbf16, #tpu.memory_space<vmem>>, %arg6: memref<1x4xf32, #tpu.memory_space<vmem>>, %arg7: memref<2x4xf32, #tpu.memory_space<vmem>>) attributes {dimension_semantics = [], scalar_prefetch = 0 : i64, scratch_operands = 0 : i64, tpu.core_type = #tpu.core_type<tc>} {
    %c0 = arith.constant 0 : index
    %c0_0 = arith.constant 0 : index
    %0 = vector.load %arg0[%c0, %c0_0] : memref<2x32xf32, #tpu.memory_space<vmem>>, vector<2x32xf32>
    %1 = arith.truncf %0 : vector<2x32xf32> to vector<2x32xbf16>
    %c0_1 = arith.constant 0 : index
    %c0_2 = arith.constant 0 : index
    %2 = vector.load %arg1[%c0_1, %c0_2] : memref<32x256xbf16, #tpu.memory_space<vmem>>, vector<32x256xbf16>
    %cst = arith.constant dense<0.000000e+00> : vector<2x256xf32>
    %3 = tpu.matmul %1, %2, %cst {dimension_numbers = #tpu.dot_dimension_numbers<[1], [0], [0], [1], [0, 0, 1, 1], [], []>} : vector<2x32xbf16>, vector<32x256xbf16>, vector<2x256xf32> -> vector<2x256xf32>
    %c0_3 = arith.constant 0 : index
    %c0_4 = arith.constant 0 : index
    %4 = vector.load %arg2[%c0_3, %c0_4] : memref<1x256xf32, #tpu.memory_space<vmem>>, vector<1x256xf32>
    %5 = vector.broadcast %4 : vector<1x256xf32> to vector<2x256xf32>
    %6 = arith.addf %3, %5 : vector<2x256xf32>
    %cst_5 = arith.constant 0.000000e+00 : f32
    %7 = vector.broadcast %cst_5 : f32 to vector<2x256xf32>
    %8 = arith.maximumf %6, %7 : vector<2x256xf32>
    %9 = arith.truncf %8 : vector<2x256xf32> to vector<2x256xbf16>
    %c0_6 = arith.constant 0 : index
    %c0_7 = arith.constant 0 : index
    %10 = vector.load %arg3[%c0_6, %c0_7] : memref<256x256xbf16, #tpu.memory_space<vmem>>, vector<256x256xbf16>
    %cst_8 = arith.constant dense<0.000000e+00> : vector<2x256xf32>
    %11 = tpu.matmul %9, %10, %cst_8 {dimension_numbers = #tpu.dot_dimension_numbers<[1], [0], [0], [1], [0, 0, 1, 1], [], []>} : vector<2x256xbf16>, vector<256x256xbf16>, vector<2x256xf32> -> vector<2x256xf32>
    %c0_9 = arith.constant 0 : index
    %c0_10 = arith.constant 0 : index
    %12 = vector.load %arg4[%c0_9, %c0_10] : memref<1x256xf32, #tpu.memory_space<vmem>>, vector<1x256xf32>
    %13 = vector.broadcast %12 : vector<1x256xf32> to vector<2x256xf32>
    %14 = arith.addf %11, %13 : vector<2x256xf32>
    %cst_11 = arith.constant 0.000000e+00 : f32
    %15 = vector.broadcast %cst_11 : f32 to vector<2x256xf32>
    %16 = arith.maximumf %14, %15 : vector<2x256xf32>
    %17 = arith.truncf %16 : vector<2x256xf32> to vector<2x256xbf16>
    %c0_12 = arith.constant 0 : index
    %c0_13 = arith.constant 0 : index
    %18 = vector.load %arg5[%c0_12, %c0_13] : memref<256x4xbf16, #tpu.memory_space<vmem>>, vector<256x4xbf16>
    %cst_14 = arith.constant dense<0.000000e+00> : vector<2x4xf32>
    %19 = tpu.matmul %17, %18, %cst_14 {dimension_numbers = #tpu.dot_dimension_numbers<[1], [0], [0], [1], [0, 0, 1, 1], [], []>} : vector<2x256xbf16>, vector<256x4xbf16>, vector<2x4xf32> -> vector<2x4xf32>
    %c0_15 = arith.constant 0 : index
    %c0_16 = arith.constant 0 : index
    %20 = vector.load %arg6[%c0_15, %c0_16] : memref<1x4xf32, #tpu.memory_space<vmem>>, vector<1x4xf32>
    %21 = vector.broadcast %20 : vector<1x4xf32> to vector<2x4xf32>
    %22 = arith.addf %19, %21 : vector<2x4xf32>
    %c0_17 = arith.constant 0 : index
    %c0_18 = arith.constant 0 : index
    %23 = vector.load %arg7[%c0_17, %c0_18] : memref<2x4xf32, #tpu.memory_space<vmem>>, vector<2x4xf32>
    tpu.vector_store %arg7[%c0_17, %c0_18], %22 {strides = array<i32>} : memref<2x4xf32, #tpu.memory_space<vmem>>, vector<2x4xf32>,
    return
  }
}

module attributes {stable_mosaic.version = 11 : i64} {
  func.func @_upscale_masks_kernel(%arg0: i32, %arg1: i32, %arg2: memref<1x64x32xbf16, #tpu.memory_space<vmem>>, %arg3: memref<1x64x32xbf16, #tpu.memory_space<vmem>>, %arg4: memref<32x32xbf16, #tpu.memory_space<vmem>>, %arg5: memref<1x32xf32, #tpu.memory_space<vmem>>, %arg6: memref<32x32xbf16, #tpu.memory_space<vmem>>, %arg7: memref<1x32xf32, #tpu.memory_space<vmem>>, %arg8: memref<1x32xf32, #tpu.memory_space<vmem>>, %arg9: memref<32x64xbf16, #tpu.memory_space<vmem>>, %arg10: memref<1x64xf32, #tpu.memory_space<vmem>>, %arg11: memref<1x64x48xbf16, #tpu.memory_space<vmem>>, %arg12: memref<1x64x48xbf16, #tpu.memory_space<vmem>>) attributes {dimension_semantics = [#tpu.dimension_semantics<parallel>, #tpu.dimension_semantics<parallel>], iteration_bounds = array<i64: 2, 1>, scalar_prefetch = 0 : i64, scratch_operands = 0 : i64, tpu.core_type = #tpu.core_type<tc>, window_params = [{transform_indices = @transform_0, window_bounds = array<i64: 1, 64, 32>}, {transform_indices = @transform_1, window_bounds = array<i64: 1, 64, 32>}, {pipeline_mode = #tpu.pipeline_mode<synchronous>, transform_indices = @transform_2, window_bounds = array<i64: 32, 32>}, {pipeline_mode = #tpu.pipeline_mode<synchronous>, transform_indices = @transform_3, window_bounds = array<i64: 1, 32>}, {pipeline_mode = #tpu.pipeline_mode<synchronous>, transform_indices = @transform_4, window_bounds = array<i64: 32, 32>}, {pipeline_mode = #tpu.pipeline_mode<synchronous>, transform_indices = @transform_5, window_bounds = array<i64: 1, 32>}, {pipeline_mode = #tpu.pipeline_mode<synchronous>, transform_indices = @transform_6, window_bounds = array<i64: 1, 32>}, {pipeline_mode = #tpu.pipeline_mode<synchronous>, transform_indices = @transform_7, window_bounds = array<i64: 32, 64>}, {pipeline_mode = #tpu.pipeline_mode<synchronous>, transform_indices = @transform_8, window_bounds = array<i64: 1, 64>}, {transform_indices = @transform_9, window_bounds = array<i64: 1, 64, 48>}, {transform_indices = @transform_10, window_bounds = array<i64: 1, 64, 48>}]} {
    %c0 = arith.constant 0 : index
    %c0_0 = arith.constant 0 : index
    %c0_1 = arith.constant 0 : index
    %0 = vector.load %arg2[%c0, %c0_0, %c0_1] : memref<1x64x32xbf16, #tpu.memory_space<vmem>>, vector<1x64x32xbf16>
    %1 = vector.shape_cast %0 : vector<1x64x32xbf16> to vector<64x32xbf16>
    %c0_2 = arith.constant 0 : index
    %c0_3 = arith.constant 0 : index
    %c0_4 = arith.constant 0 : index
    %2 = vector.load %arg3[%c0_2, %c0_3, %c0_4] : memref<1x64x32xbf16, #tpu.memory_space<vmem>>, vector<1x64x32xbf16>
    %3 = vector.shape_cast %2 : vector<1x64x32xbf16> to vector<64x32xbf16>
    %4 = arith.addf %1, %3 : vector<64x32xbf16>
    %c0_5 = arith.constant 0 : index
    %c0_6 = arith.constant 0 : index
    %5 = vector.load %arg4[%c0_5, %c0_6] : memref<32x32xbf16, #tpu.memory_space<vmem>>, vector<32x32xbf16>
    %cst = arith.constant dense<0.000000e+00> : vector<64x32xf32>
    %6 = tpu.matmul %4, %5, %cst {dimension_numbers = #tpu.dot_dimension_numbers<[1], [0], [0], [1], [0, 0, 1, 1], [], []>} : vector<64x32xbf16>, vector<32x32xbf16>, vector<64x32xf32> -> vector<64x32xf32>
    %c0_7 = arith.constant 0 : index
    %c0_8 = arith.constant 0 : index
    %7 = vector.load %arg5[%c0_7, %c0_8] : memref<1x32xf32, #tpu.memory_space<vmem>>, vector<1x32xf32>
    %8 = vector.broadcast %7 : vector<1x32xf32> to vector<64x32xf32>
    %9 = arith.addf %6, %8 : vector<64x32xf32>
    %10 = arith.truncf %9 : vector<64x32xf32> to vector<64x32xbf16>
    %c0_9 = arith.constant 0 : index
    %c0_10 = arith.constant 0 : index
    %11 = vector.load %arg6[%c0_9, %c0_10] : memref<32x32xbf16, #tpu.memory_space<vmem>>, vector<32x32xbf16>
    %cst_11 = arith.constant dense<0.000000e+00> : vector<64x32xf32>
    %12 = tpu.matmul %10, %11, %cst_11 {dimension_numbers = #tpu.dot_dimension_numbers<[1], [0], [0], [1], [0, 0, 1, 1], [], []>} : vector<64x32xbf16>, vector<32x32xbf16>, vector<64x32xf32> -> vector<64x32xf32>
    %13 = arith.subf %9, %12 : vector<64x32xf32>
    %14 = arith.mulf %13, %13 : vector<64x32xf32>
    %15 = arith.truncf %14 : vector<64x32xf32> to vector<64x32xbf16>
    %c0_12 = arith.constant 0 : index
    %c0_13 = arith.constant 0 : index
    %16 = vector.load %arg6[%c0_12, %c0_13] : memref<32x32xbf16, #tpu.memory_space<vmem>>, vector<32x32xbf16>
    %cst_14 = arith.constant dense<0.000000e+00> : vector<64x32xf32>
    %17 = tpu.matmul %15, %16, %cst_14 {dimension_numbers = #tpu.dot_dimension_numbers<[1], [0], [0], [1], [0, 0, 1, 1], [], []>} : vector<64x32xbf16>, vector<32x32xbf16>, vector<64x32xf32> -> vector<64x32xf32>
    %cst_15 = arith.constant 9.99999997E-7 : f32
    %18 = vector.broadcast %cst_15 : f32 to vector<64x32xf32>
    %19 = arith.addf %17, %18 : vector<64x32xf32>
    %20 = math.rsqrt %19 : vector<64x32xf32>
    %21 = arith.mulf %13, %20 : vector<64x32xf32>
    %c0_16 = arith.constant 0 : index
    %c0_17 = arith.constant 0 : index
    %22 = vector.load %arg7[%c0_16, %c0_17] : memref<1x32xf32, #tpu.memory_space<vmem>>, vector<1x32xf32>
    %23 = vector.broadcast %22 : vector<1x32xf32> to vector<64x32xf32>
    %24 = arith.mulf %21, %23 : vector<64x32xf32>
    %c0_18 = arith.constant 0 : index
    %c0_19 = arith.constant 0 : index
    %25 = vector.load %arg8[%c0_18, %c0_19] : memref<1x32xf32, #tpu.memory_space<vmem>>, vector<1x32xf32>
    %26 = vector.broadcast %25 : vector<1x32xf32> to vector<64x32xf32>
    %27 = arith.addf %24, %26 : vector<64x32xf32>
    %28 = arith.truncf %27 : vector<64x32xf32> to vector<64x32xbf16>
    %29 = arith.mulf %28, %28 : vector<64x32xbf16>
    %30 = arith.mulf %28, %29 : vector<64x32xbf16>
    %cst_20 = arith.constant 4.467770e-02 : bf16
    %31 = vector.broadcast %cst_20 : bf16 to vector<64x32xbf16>
    %32 = arith.mulf %31, %30 : vector<64x32xbf16>
    %33 = arith.addf %28, %32 : vector<64x32xbf16>
    %cst_21 = arith.constant 7.968750e-01 : bf16
    %34 = vector.broadcast %cst_21 : bf16 to vector<64x32xbf16>
    %35 = arith.mulf %34, %33 : vector<64x32xbf16>
    %36 = math.tanh %35 : vector<64x32xbf16>
    %cst_22 = arith.constant 1.000000e+00 : bf16
    %37 = vector.broadcast %cst_22 : bf16 to vector<64x32xbf16>
    %38 = arith.addf %37, %36 : vector<64x32xbf16>
    %cst_23 = arith.constant 5.000000e-01 : bf16
    %39 = vector.broadcast %cst_23 : bf16 to vector<64x32xbf16>
    %40 = arith.mulf %39, %38 : vector<64x32xbf16>
    %41 = arith.mulf %28, %40 : vector<64x32xbf16>
    %c0_24 = arith.constant 0 : index
    %c0_25 = arith.constant 0 : index
    %42 = vector.load %arg9[%c0_24, %c0_25] : memref<32x64xbf16, #tpu.memory_space<vmem>>, vector<32x64xbf16>
    %cst_26 = arith.constant dense<0.000000e+00> : vector<64x64xf32>
    %43 = tpu.matmul %41, %42, %cst_26 {dimension_numbers = #tpu.dot_dimension_numbers<[1], [0], [0], [1], [0, 0, 1, 1], [], []>} : vector<64x32xbf16>, vector<32x64xbf16>, vector<64x64xf32> -> vector<64x64xf32>
    %c0_27 = arith.constant 0 : index
    %c0_28 = arith.constant 0 : index
    %44 = vector.load %arg10[%c0_27, %c0_28] : memref<1x64xf32, #tpu.memory_space<vmem>>, vector<1x64xf32>
    %45 = vector.broadcast %44 : vector<1x64xf32> to vector<64x64xf32>
    %46 = arith.addf %43, %45 : vector<64x64xf32>
    %47 = arith.truncf %46 : vector<64x64xf32> to vector<64x64xbf16>
    %48 = arith.mulf %47, %47 : vector<64x64xbf16>
    %49 = arith.mulf %47, %48 : vector<64x64xbf16>
    %cst_29 = arith.constant 4.467770e-02 : bf16
    %50 = vector.broadcast %cst_29 : bf16 to vector<64x64xbf16>
    %51 = arith.mulf %50, %49 : vector<64x64xbf16>
    %52 = arith.addf %47, %51 : vector<64x64xbf16>
    %cst_30 = arith.constant 7.968750e-01 : bf16
    %53 = vector.broadcast %cst_30 : bf16 to vector<64x64xbf16>
    %54 = arith.mulf %53, %52 : vector<64x64xbf16>
    %55 = math.tanh %54 : vector<64x64xbf16>
    %cst_31 = arith.constant 1.000000e+00 : bf16
    %56 = vector.broadcast %cst_31 : bf16 to vector<64x64xbf16>
    %57 = arith.addf %56, %55 : vector<64x64xbf16>
    %cst_32 = arith.constant 5.000000e-01 : bf16
    %58 = vector.broadcast %cst_32 : bf16 to vector<64x64xbf16>
    %59 = arith.mulf %58, %57 : vector<64x64xbf16>
    %60 = arith.mulf %47, %59 : vector<64x64xbf16>
    %c0_33 = arith.constant 0 : index
    %c0_34 = arith.constant 0 : index
    %c0_35 = arith.constant 0 : index
    %61 = vector.load %arg11[%c0_33, %c0_34, %c0_35] : memref<1x64x48xbf16, #tpu.memory_space<vmem>>, vector<1x64x48xbf16>
    %62 = vector.shape_cast %61 : vector<1x64x48xbf16> to vector<64x48xbf16>
    %cst_36 = arith.constant dense<0.000000e+00> : vector<64x48xf32>
    %63 = tpu.matmul %60, %62, %cst_36 {dimension_numbers = #tpu.dot_dimension_numbers<[1], [0], [0], [1], [0, 0, 1, 1], [], []>} : vector<64x64xbf16>, vector<64x48xbf16>, vector<64x48xf32> -> vector<64x48xf32>
    %64 = arith.truncf %63 : vector<64x48xf32> to vector<64x48xbf16>
    %c0_37 = arith.constant 0 : index
    %c0_38 = arith.constant 0 : index
    %c0_39 = arith.constant 0 : index
    %65 = vector.load %arg12[%c0_37, %c0_38, %c0_39] : memref<1x64x48xbf16, #tpu.memory_space<vmem>>, vector<1x64x48xbf16>
    %66 = vector.shape_cast %65 : vector<1x64x48xbf16> to vector<64x48xbf16>
    %67 = vector.shape_cast %64 : vector<64x48xbf16> to vector<1x64x48xbf16>
    tpu.vector_store %arg12[%c0_37, %c0_38, %c0_39], %67 {strides = array<i32>} : memref<1x64x48xbf16, #tpu.memory_space<vmem>>, vector<1x64x48xbf16>,
    return
  }
  func.func @transform_0(%arg0: i32, %arg1: i32) -> (i32, i32, i32) {
    %c0_i32 = arith.constant 0 : i32
    %c0_i32_0 = arith.constant 0 : i32
    return %arg0, %arg1, %c0_i32 : i32, i32, i32
  }
  func.func @transform_1(%arg0: i32, %arg1: i32) -> (i32, i32, i32) {
    %c0_i32 = arith.constant 0 : i32
    %c0_i32_0 = arith.constant 0 : i32
    %c0_i32_1 = arith.constant 0 : i32
    return %c0_i32, %arg1, %c0_i32_0 : i32, i32, i32
  }
  func.func @transform_2(%arg0: i32, %arg1: i32) -> (i32, i32) {
    %c0_i32 = arith.constant 0 : i32
    %c0_i32_0 = arith.constant 0 : i32
    %c0_i32_1 = arith.constant 0 : i32
    return %c0_i32, %c0_i32_0 : i32, i32
  }
  func.func @transform_3(%arg0: i32, %arg1: i32) -> (i32, i32) {
    %c0_i32 = arith.constant 0 : i32
    %c0_i32_0 = arith.constant 0 : i32
    %c0_i32_1 = arith.constant 0 : i32
    return %c0_i32, %c0_i32_0 : i32, i32
  }
  func.func @transform_4(%arg0: i32, %arg1: i32) -> (i32, i32) {
    %c0_i32 = arith.constant 0 : i32
    %c0_i32_0 = arith.constant 0 : i32
    %c0_i32_1 = arith.constant 0 : i32
    return %c0_i32, %c0_i32_0 : i32, i32
  }
  func.func @transform_5(%arg0: i32, %arg1: i32) -> (i32, i32) {
    %c0_i32 = arith.constant 0 : i32
    %c0_i32_0 = arith.constant 0 : i32
    %c0_i32_1 = arith.constant 0 : i32
    return %c0_i32, %c0_i32_0 : i32, i32
  }
  func.func @transform_6(%arg0: i32, %arg1: i32) -> (i32, i32) {
    %c0_i32 = arith.constant 0 : i32
    %c0_i32_0 = arith.constant 0 : i32
    %c0_i32_1 = arith.constant 0 : i32
    return %c0_i32, %c0_i32_0 : i32, i32
  }
  func.func @transform_7(%arg0: i32, %arg1: i32) -> (i32, i32) {
    %c0_i32 = arith.constant 0 : i32
    %c0_i32_0 = arith.constant 0 : i32
    %c0_i32_1 = arith.constant 0 : i32
    return %c0_i32, %c0_i32_0 : i32, i32
  }
  func.func @transform_8(%arg0: i32, %arg1: i32) -> (i32, i32) {
    %c0_i32 = arith.constant 0 : i32
    %c0_i32_0 = arith.constant 0 : i32
    %c0_i32_1 = arith.constant 0 : i32
    return %c0_i32, %c0_i32_0 : i32, i32
  }
  func.func @transform_9(%arg0: i32, %arg1: i32) -> (i32, i32, i32) {
    %c0_i32 = arith.constant 0 : i32
    %c0_i32_0 = arith.constant 0 : i32
    %c0_i32_1 = arith.constant 0 : i32
    return %arg0, %c0_i32, %c0_i32_0 : i32, i32, i32
  }
  func.func @transform_10(%arg0: i32, %arg1: i32) -> (i32, i32, i32) {
    %c0_i32 = arith.constant 0 : i32
    %c0_i32_0 = arith.constant 0 : i32
    return %arg0, %arg1, %c0_i32 : i32, i32, i32
  }
}

</mosaic_0001>

<bundles_post_ra>
// kernel: mask_decoder_forward.4
= control target key start
LH: loop header
LB: loop body
LE: loop exit
PB: predicated region body
PF: predicated region fallthrough
CT: control target
= control target key end

     0   :  { %8 = vsyncpa [#allocation3], 0  ;;  %s224_s0 = inlined_call_operand.vmem [shape: f32[18,32], index: 0, kind: input, shape index: {}]   ;;  %s225_s1 = inlined_call_operand.hbm [shape: bf16[32,32], index: 1, kind: input, shape index: {}]   ;;  %s226_s2 = inlined_call_operand.hbm [shape: f32[1,32], index: 2, kind: input, shape index: {}]   ;;  %s227_s3 = inlined_call_operand.vmem [shape: f32[18,32], index: 3, kind: output, shape index: {}]  }
   0x1   :  { %s16_s14 = sshll.u32 %s225_s1, 4  ;;  %s17_s14 = int_to_ptr.hbm [resolvable:$true] %s16_s14 }
   0x2   :  { %9 = vsyncpa [#allocation5], 0  ;;  %s176_s15 = smov [#allocation2]   ;;  %s30_s19 = sshll.u32 %s226_s2, 4  ;;  %s31_s19 = int_to_ptr.hbm [resolvable:$true] %s30_s19 }
   0x3   :  { %s18_s16 = sshll.u32 %s176_s15, 4  ;;  %s177_s20 = smov 64   ;;  %s19_s16 = int_to_ptr.vmem [resolvable:$true] %s18_s16 }
   0x4   :  { %s178_s21 = smov 4   ;;  %s179_s22 = smov [#allocation4]  }
   0x5   :  { %24 = dma.hbm_to_vmem [thread:$0]  %s17_s14, 256, %s19_s16, [#allocation3], %s177_s20, %s177_s20, %s178_s21  }
   0x6   :  { %s32_s23 = sshll.u32 %s179_s22, 4  ;;  %s33_s23 = int_to_ptr.vmem [resolvable:$true] %s32_s23 }
   0x7   :  { %35 = dma.hbm_to_vmem [thread:$0]  %s31_s19, 16, %s33_s23, [#allocation5]  }
   0x8   :  { %172 = dma.done.wait [#allocation3], 256  }
   0x9   :  { %173 = vsyncadd [#allocation3], 4294967040 }
   0xa   :  { %174 = dma.done.wait [#allocation5], 16  }
   0xb   :  { %175 = vsyncadd [#allocation5], 4294967280  ;;  %v116_v0 = vld [vmem:[#allocation2 + $0x8] sm:$0xff]  ;;  %v115_v1 = vld [vmem:[#allocation2] sm:$0xff]  ;;  %vm70_vm0 = vcmask 261120   ;;  %vm97_vm1 = vcmask 254976  }
   0xc   :  { %83 = vmatpush.bf16.msra.mxu0 %v116_v0  ;;  %117 = vmatpush.bf16.msra.mxu1 %v116_v0  ;;  %v45_v2 = vld [vmem:[%s224_s0] sm:$0xff]  ;;  %v46_v3 = vld [vmem:[%s224_s0 + $0x8] sm:$0xff]  ;;  %v47_v4 = vld [vmem:[%s224_s0 + $0x10] sm:$0x3] }
   0xd   :  { %v48_v5 = vpack.c.bf16 %v46_v3, %v45_v2  ;;  %v49_v6 = vpack.c.bf16 %v47_v4, %v47_v4  ;;  %v123_v7 = vld [vmem:[#allocation4] ss:$0 sm:$0xff] }
  0x10   :  { %84 = vmatpush.bf16.msra.mxu0 %v115_v1  ;;  %118 = vmatpush.bf16.msra.mxu1 %v115_v1 }
  0x13   :  { %113 = vmatmul.msk.bf16.vlgmr.msra.gmra.mxu0 %vm70_vm0, %v48_v5  ;;  %114 = vmatmul.msk.bf16.vlgmr.msra.gmra.mxu1 %vm70_vm0, %v49_v6 }
  0x90   :  { %v86_v8 = vpop.f32.mrf.mxu0  ;;  %v91_v9 = vpop.f32.mrf.mxu1 }
  0x91   :  { %v87_v10 = vadd.f32 %v123_v7, %v86_v8  ;;  %v92_v11 = vadd.f32 %v123_v7, %v91_v9 }
  0x93   :  { %95 = vst.msk [vmem:[%s227_s3] sm:$0xff] %vm70_vm0, %v87_v10 }
  0x94   :  { %98 = vst.msk [vmem:[%s227_s3 + $0x10] sm:$0x3] %vm97_vm1, %v92_v11 }
  0x98   :  { %v88_v12 = vpop.f32.mrf.mxu0  ;;  %v93_v13 = vpop.f32.mrf.mxu1 }
  0x99   :  { %v89_v14 = vadd.f32 %v123_v7, %v88_v12 }
  0x9b   :  { %96 = vst.msk [vmem:[%s227_s3 + $0x8] sm:$0xff] %vm70_vm0, %v89_v14 }
  0x9c   :  { %103 = vsyncpa [#allocation3], 1 }
  0x9d   :  { %104 = vsyncpa [#allocation5], 1 }

// kernel: mask_decoder_forward.5
= control target key start
LH: loop header
LB: loop body
LE: loop exit
PB: predicated region body
PF: predicated region fallthrough
CT: control target
= control target key end

     0   :  { %vm49_vm0 = vcmask 261120   ;;  %vm142_vm1 = vcmask 25600   ;;  %s687_s1 = inlined_call_operand.vmem [shape: bf16[3,32,32], index: 1, kind: input, shape index: {}]   ;;  %s688_s0 = inlined_call_operand.vmem [shape: f32[3,2,32], index: 0, kind: input, shape index: {}]   ;;  %s689_s2 = inlined_call_operand.vmem [shape: f32[3,1,32], index: 2, kind: input, shape index: {}]   ;;  %s690_s4 = inlined_call_operand.vmem [shape: f32[3,1,32], index: 4, kind: input, shape index: {}]   ;;  %s691_s3 = inlined_call_operand.vmem [shape: bf16[3,32,32], index: 3, kind: input, shape index: {}]   ;;  %s692_s6 = inlined_call_operand.vmem [shape: f32[3,1,4], index: 6, kind: input, shape index: {}]   ;;  %s693_s5 = inlined_call_operand.vmem [shape: bf16[3,32,4], index: 5, kind: input, shape index: {}]   ;;  %s694_s7 = inlined_call_operand.vmem [shape: f32[3,2,4], index: 7, kind: output, shape index: {}]  }
   0x1   :  { %v510_v0 = vld [vmem:[%s687_s1 + $0x8] sm:$0xff]  ;;  %v509_v1 = vld [vmem:[%s687_s1] sm:$0xff]  ;;  %v516_v15 = vld [vmem:[%s687_s1 + $0x18] sm:$0xff] }
   0x2   :  { %59 = vmatpush.bf16.msra.mxu0 %v510_v0  ;;  %v27_v2 = vld [vmem:[%s688_s0] sm:$0x3]  ;;  %v512_v4 = vld [vmem:[%s691_s3 + $0x8] sm:$0xff]  ;;  %178 = vmatpush.bf16.msra.mxu3 %v516_v15  ;;  %v515_v17 = vld [vmem:[%s687_s1 + $0x10] sm:$0xff] }
   0x3   :  { %v28_v3 = vpack.c.bf16 %v27_v2, %v27_v2  ;;  %97 = vmatpush.bf16.msra.mxu1 %v512_v4  ;;  %v511_v5 = vld [vmem:[%s691_s3] sm:$0xff]  ;;  %v514_v12 = vld [vmem:[%s693_s5 + $0x8] sm:$0xff]  ;;  %v518_v29 = vld [vmem:[%s691_s3 + $0x18] sm:$0xff] }
   0x4   :  { %v527_v6 = vld [vmem:[%s689_s2] ss:$0 sm:$0xff]  ;;  %135 = vmatpush.bf16.msra.mxu2 %v514_v12  ;;  %v522_v14 = vld [vmem:[%s687_s1 + $0x28] sm:$0xff]  ;;  %v421_v18 = vld [vmem:[%s688_s0 + $0x2] sm:$0x3] }
   0x5   :  { %v513_v13 = vld [vmem:[%s693_s5] sm:$0xff]  ;;  %v146_v19 = vpack.c.bf16 %v421_v18, %v421_v18  ;;  %v524_v28 = vld [vmem:[%s691_s3 + $0x28] sm:$0xff]  ;;  %v517_v35 = vld [vmem:[%s691_s3 + $0x10] sm:$0xff] }
   0x6   :  { %60 = vmatpush.bf16.msra.mxu0 %v509_v1  ;;  %v521_v16 = vld [vmem:[%s687_s1 + $0x20] sm:$0xff]  ;;  %179 = vmatpush.bf16.msra.mxu3 %v515_v17  ;;  %v520_v38 = vld [vmem:[%s693_s5 + $0x18] sm:$0xff]  ;;  %v526_v39 = vld [vmem:[%s693_s5 + $0x28] sm:$0xff] }
   0x7   :  { %98 = vmatpush.bf16.msra.mxu1 %v511_v5  ;;  %v528_v20 = vld [vmem:[%s690_s4] ss:$0 sm:$0xff]  ;;  %v465_v26 = vld [vmem:[%s688_s0 + $0x4] sm:$0x3]  ;;  %v530_v30 = vld [vmem:[%s689_s2 + $0x1] ss:$0 sm:$0xff] }
   0x8   :  { %136 = vmatpush.bf16.msra.mxu2 %v513_v13  ;;  %v269_v27 = vpack.c.bf16 %v465_v26, %v465_v26  ;;  %v523_v31 = vld [vmem:[%s691_s3 + $0x20] sm:$0xff]  ;;  %v519_v50 = vld [vmem:[%s693_s5 + $0x10] sm:$0xff] }
   0x9   :  { %402 = vmatmul.msk.bf16.vlgmr.msra.gmra.mxu0 %vm49_vm0, %v28_v3  ;;  %435 = vmatmul.msk.bf16.vlgmr.msra.gmra.mxu3 %vm49_vm0, %v146_v19  ;;  %v529_v40 = vld [vmem:[%s692_s6] ss:$0 sm:$0xff]  ;;  %v531_v44 = vld [vmem:[%s689_s2 + $0x2] ss:$0 sm:$0xff]  ;;  %v532_v52 = vld [vmem:[%s690_s4 + $0x1] ss:$0 sm:$0xff] }
   0xa   :  { %341 = vmatpush.bf16.msrb.mxu3 %v524_v28  ;;  %218 = vmatpush.bf16.msrb.mxu0 %v518_v29  ;;  %v525_v51 = vld [vmem:[%s693_s5 + $0x20] sm:$0xff] }
   0xb   :  { %258 = vmatpush.bf16.msrb.mxu1 %v520_v38  ;;  %v533_v58 = vld [vmem:[%s690_s4 + $0x2] ss:$0 sm:$0xff]  ;;  %v534_v0 = vld [vmem:[%s692_s6 + $0x1] ss:$0 sm:$0xff] }
   0xc   :  { %301 = vmatpush.bf16.msrb.mxu2 %v522_v14  ;;  %v535_v4 = vld [vmem:[%s692_s6 + $0x2] ss:$0 sm:$0xff] }
   0xe   :  { %342 = vmatpush.bf16.msrb.mxu3 %v523_v31  ;;  %219 = vmatpush.bf16.msrb.mxu0 %v517_v35 }
   0xf   :  { %259 = vmatpush.bf16.msrb.mxu1 %v519_v50 }
  0x10   :  { %302 = vmatpush.bf16.msrb.mxu2 %v521_v16 }
  0x12   :  { %381 = vmatpush.bf16.msra.mxu0 %v526_v39 }
  0x16   :  { %382 = vmatpush.bf16.msra.mxu0 %v525_v51 }
  0x86   :  { %v62_v7 = vpop.f32.mrf.mxu0 }
  0x87   :  { %v63_v8 = vadd.f32 %v527_v6, %v62_v7 }
  0x89   :  { %v66_v9 = vmax.f32 %v63_v8, 0.0 }
  0x8b   :  { %v67_v10 = vpack.c.bf16 %v66_v9, %v66_v9 }
  0x8c   :  { %v181_v32 = vpop.f32.mrf.mxu3 }
  0x8d   :  { %411 = vmatmul.msk.bf16.vlgmr.msra.gmra.mxu1 %vm49_vm0, %v67_v10  ;;  %v182_v33 = vadd.f32 %v530_v30, %v181_v32 }
  0x8e   :  { %v64_v11 = vpop.f32.mrf.mxu0 }
  0x8f   :  { %v185_v34 = vmax.f32 %v182_v33, 0.0 }
  0x91   :  { %v186_v36 = vpack.c.bf16 %v185_v34, %v185_v34 }
  0x93   :  { %449 = vmatmul.msk.bf16.vlgmr.msrb.gmra.mxu0 %vm49_vm0, %v186_v36 }
  0x94   :  { %v183_v37 = vpop.f32.mrf.mxu3 }
 0x10a   :  { %v100_v21 = vpop.f32.mrf.mxu1 }
 0x10b   :  { %v101_v22 = vadd.f32 %v528_v20, %v100_v21 }
 0x10d   :  { %v104_v23 = vmax.f32 %v101_v22, 0.0 }
 0x10f   :  { %v105_v24 = vpack.c.bf16 %v104_v23, %v104_v23 }
 0x110   :  { %v221_v53 = vpop.f32.mrf.mxu0 }
 0x111   :  { %420 = vmatmul.msk.bf16.vlgmr.msra.gmra.mxu2 %vm49_vm0, %v105_v24  ;;  %v222_v54 = vadd.f32 %v532_v52, %v221_v53 }
 0x112   :  { %v102_v25 = vpop.f32.mrf.mxu1 }
 0x113   :  { %v225_v55 = vmax.f32 %v222_v54, 0.0 }
 0x115   :  { %v226_v56 = vpack.c.bf16 %v225_v55, %v225_v55 }
 0x117   :  { %463 = vmatmul.msk.bf16.vlgmr.msrb.gmra.mxu1 %vm49_vm0, %v226_v56 }
 0x118   :  { %v223_v57 = vpop.f32.mrf.mxu0 }
 0x121   :  { %479 = vmatmul.msk.bf16.vlgmr.msrb.gmra.mxu2 %vm49_vm0, %v269_v27 }
 0x194   :  { %v138_v41 = vpop.f32.mrf.mxu2  ;;  %v261_v1 = vpop.f32.mrf.mxu1 }
 0x195   :  { %v139_v42 = vadd.f32 %v529_v40, %v138_v41  ;;  %v262_v2 = vadd.f32 %v534_v0, %v261_v1 }
 0x197   :  { %143 = vst.msk [vmem:[%s694_s7] sm:$0x3] %vm142_vm1, %v139_v42 }
 0x198   :  { %464 = vst.msk [vmem:[%s694_s7 + $0x2] sm:$0x3] %vm142_vm1, %v262_v2 }
 0x19c   :  { %v140_v43 = vpop.f32.mrf.mxu2  ;;  %v263_v3 = vpop.f32.mrf.mxu1 }
 0x1a4   :  { %v304_v45 = vpop.f32.mrf.mxu2 }
 0x1a5   :  { %v305_v46 = vadd.f32 %v531_v44, %v304_v45 }
 0x1a7   :  { %v308_v47 = vmax.f32 %v305_v46, 0.0 }
 0x1a9   :  { %v309_v48 = vpack.c.bf16 %v308_v47, %v308_v47 }
 0x1ab   :  { %493 = vmatmul.msk.bf16.vlgmr.msrb.gmra.mxu3 %vm49_vm0, %v309_v48 }
 0x1ac   :  { %v306_v49 = vpop.f32.mrf.mxu2 }
 0x22e   :  { %v344_v59 = vpop.f32.mrf.mxu3 }
 0x22f   :  { %v345_v60 = vadd.f32 %v533_v58, %v344_v59 }
 0x231   :  { %v348_v61 = vmax.f32 %v345_v60, 0.0 }
 0x233   :  { %v349_v62 = vpack.c.bf16 %v348_v61, %v348_v61 }
 0x235   :  { %507 = vmatmul.msk.bf16.vlgmr.msra.gmra.mxu0 %vm49_vm0, %v349_v62 }
 0x236   :  { %v346_v63 = vpop.f32.mrf.mxu3 }
 0x2b2   :  { %v384_v5 = vpop.f32.mrf.mxu0 }
 0x2b3   :  { %v385_v6 = vadd.f32 %v535_v4, %v384_v5 }
 0x2b5   :  { %508 = vst.msk [vmem:[%s694_s7 + $0x4] sm:$0x3] %vm142_vm1, %v385_v6 }
 0x2ba   :  { %v386_v7 = vpop.f32.mrf.mxu0 }

// kernel: mask_decoder_forward.7
= control target key start
LH: loop header
LB: loop body
LE: loop exit
PB: predicated region body
PF: predicated region fallthrough
CT: control target
= control target key end

     0   :  { %12 = vsyncpa [#allocation3], 0  ;;  %s1100_s0 = inlined_call_operand.vmem [shape: f32[2,32], index: 0, kind: input, shape index: {}]   ;;  %s1101_s1 = inlined_call_operand.hbm [shape: bf16[32,256], index: 1, kind: input, shape index: {}]   ;;  %s1102_s2 = inlined_call_operand.hbm [shape: f32[1,256], index: 2, kind: input, shape index: {}]   ;;  %s1103_s3 = inlined_call_operand.hbm [shape: bf16[256,256], index: 3, kind: input, shape index: {}]   ;;  %s1104_s4 = inlined_call_operand.hbm [shape: f32[1,256], index: 4, kind: input, shape index: {}]   ;;  %s1105_s5 = inlined_call_operand.vmem [shape: bf16[256,4], index: 5, kind: input, shape index: {}]   ;;  %s1106_s6 = inlined_call_operand.hbm [shape: f32[1,4], index: 6, kind: input, shape index: {}]   ;;  %s1107_s7 = inlined_call_operand.vmem [shape: f32[2,4], index: 7, kind: output, shape index: {}]  }
   0x1   :  { %13 = vsyncpa [#allocation5], 0  ;;  %s35_s26 = sshll.u32 %s1102_s2, 4  ;;  %s36_s26 = int_to_ptr.hbm [resolvable:$true] %s35_s26 }
   0x2   :  { %14 = vsyncpa [#allocation8], 0  ;;  %s982_s27 = smov [#allocation4]   ;;  %s59_s8 = sshll.u32 %s1104_s4, 4  ;;  %s60_s8 = int_to_ptr.hbm [resolvable:$true] %s59_s8 }
   0x3   :  { %s37_s28 = sshll.u32 %s982_s27, 4  ;;  %s983_s9 = smov [#allocation7]   ;;  %s38_s28 = int_to_ptr.vmem [resolvable:$true] %s37_s28 }
   0x4   :  { %40 = dma.hbm_to_vmem [thread:$0]  %s36_s26, 32, %s38_s28, [#allocation5]  }
   0x5   :  { %s61_s10 = sshll.u32 %s983_s9, 4  ;;  %s21_s13 = sshll.u32 %s1101_s1, 4  ;;  %s62_s10 = int_to_ptr.vmem [resolvable:$true] %s61_s10  ;;  %s22_s13 = int_to_ptr.hbm [resolvable:$true] %s21_s13 }
   0x6   :  { %64 = dma.hbm_to_vmem [thread:$0]  %s60_s8, 32, %s62_s10, [#allocation8]  }
   0x7   :  { %s984_s2 = smov [#allocation2]   ;;  %s45_s17 = sshll.u32 %s1103_s3, 4  ;;  %s46_s17 = int_to_ptr.hbm [resolvable:$true] %s45_s17 }
   0x8   :  { %s23_s14 = sshll.u32 %s984_s2, 4  ;;  %s985_s18 = smov 128   ;;  %s24_s14 = int_to_ptr.vmem [resolvable:$true] %s23_s14 }
   0x9   :  { %s986_s4 = smov 8   ;;  %s987_s19 = smov [#allocation6]  }
   0xa   :  { %29 = dma.hbm_to_vmem [thread:$0]  %s22_s13, 512, %s24_s14, [#allocation3], %s985_s18, %s985_s18, %s986_s4  }
   0xb   :  { %s47_s20 = sshll.u32 %s987_s19, 4  ;;  %s72_s1 = sshll.u32 %s1106_s6, 4  ;;  %s48_s20 = int_to_ptr.vmem [resolvable:$true] %s47_s20  ;;  %s73_s1 = int_to_ptr.hbm [resolvable:$true] %s72_s1 }
   0xc   :  { %53 = dma.hbm_to_vmem [thread:$0]  %s46_s17, 4096, %s48_s20, [#allocation5], %s985_s18, %s985_s18, %s986_s4  }
   0xd   :  { %s988_s23 = smov [#allocation9]  }
   0xe   :  { %s74_s24 = sshll.u32 %s988_s23, 4  ;;  %s75_s24 = int_to_ptr.vmem [resolvable:$true] %s74_s24 }
   0xf   :  { %77 = dma.hbm_to_vmem [thread:$0]  %s73_s1, 16, %s75_s24, [#allocation8]  }
  0x10   :  { %976 = dma.done.wait [#allocation3], 512  }
  0x11   :  { %977 = vsyncadd [#allocation3], 4294966784 }
  0x12   :  { %978 = dma.done.wait [#allocation5], 4128  }
  0x13   :  { %979 = vsyncadd [#allocation5], 4294963168 }
  0x14   :  { %980 = dma.done.wait [#allocation8], 48  }
  0x15   :  { %981 = vsyncadd [#allocation8], 4294967248  ;;  %vm131_vm0 = vcmask 261120   ;;  %v596_v0 = vld [vmem:[#allocation2 + $0x10] sm:$0xf]  ;;  %vm577_vm1 = vcmask 25600  }
  0x16   :  { %v799_v1 = vld [vmem:[#allocation2 + $0x14] sm:$0xf0]  ;;  %v798_v2 = vld [vmem:[#allocation2 + $0x14] sm:$0xf]  ;;  %v598_v4 = vld [vmem:[#allocation2 + $0x18] sm:$0xf0] }
  0x17   :  { %v597_v3 = vor.u32 %v799_v1, %v596_v0  ;;  %v588_v5 = vld [vmem:[#allocation2] sm:$0xf]  ;;  %v797_v6 = vld [vmem:[#allocation2 + $0x4] sm:$0xf0]  ;;  %v601_v7 = vor.u32 %v798_v2, %v598_v4  ;;  %v796_v8 = vld [vmem:[#allocation2 + $0x4] sm:$0xf] }
  0x18   :  { %v590_v9 = vld [vmem:[#allocation2 + $0x8] sm:$0xf0]  ;;  %v99_v10 = vld [vmem:[%s1100_s0] sm:$0x3]  ;;  %v589_v11 = vor.u32 %v797_v6, %v588_v5  ;;  %v662_v12 = vld [vmem:[#allocation6 + $0x70] sm:$0xf] }
  0x19   :  { %141 = vmatpush.bf16.msra.mxu0 %v597_v3  ;;  %v815_v13 = vld [vmem:[#allocation6 + $0x74] sm:$0xf0]  ;;  %v726_v14 = vld [vmem:[#allocation6 + $0xf0] sm:$0xf]  ;;  %154 = vmatpush.bf16.msra.mxu1 %v601_v7  ;;  %v593_v15 = vor.u32 %v796_v8, %v590_v9  ;;  %v814_v18 = vld [vmem:[#allocation6 + $0x74] sm:$0xf]  ;;  %v100_v25 = vpack.c.bf16 %v99_v10, %v99_v10 }
  0x1a   :  { %v663_v16 = vor.u32 %v815_v13, %v662_v12  ;;  %v831_v17 = vld [vmem:[#allocation6 + $0xf4] sm:$0xf0]  ;;  %v664_v19 = vld [vmem:[#allocation6 + $0x78] sm:$0xf0]  ;;  %v830_v22 = vld [vmem:[#allocation6 + $0xf4] sm:$0xf] }
  0x1b   :  { %v727_v20 = vor.u32 %v831_v17, %v726_v14  ;;  %v667_v21 = vor.u32 %v814_v18, %v664_v19  ;;  %v728_v23 = vld [vmem:[#allocation6 + $0xf8] sm:$0xf0]  ;;  %v654_v24 = vld [vmem:[#allocation6 + $0x60] sm:$0xf]  ;;  %v813_v27 = vld [vmem:[#allocation6 + $0x64] sm:$0xf0] }
  0x1c   :  { %363 = vmatpush.bf16.msra.mxu2 %v663_v16  ;;  %v731_v26 = vor.u32 %v830_v22, %v728_v23  ;;  %v718_v28 = vld [vmem:[#allocation6 + $0xe0] sm:$0xf]  ;;  %v829_v29 = vld [vmem:[#allocation6 + $0xe4] sm:$0xf0]  ;;  %v655_v30 = vor.u32 %v813_v27, %v654_v24  ;;  %v812_v32 = vld [vmem:[#allocation6 + $0x64] sm:$0xf] }
  0x1d   :  { %142 = vmatpush.bf16.msra.mxu0 %v589_v11  ;;  %376 = vmatpush.bf16.msra.mxu3 %v727_v20  ;;  %v719_v31 = vor.u32 %v829_v29, %v718_v28  ;;  %v656_v33 = vld [vmem:[#allocation6 + $0x68] sm:$0xf0]  ;;  %v828_v34 = vld [vmem:[#allocation6 + $0xe4] sm:$0xf]  ;;  %v646_v37 = vld [vmem:[#allocation6 + $0x50] sm:$0xf] }
  0x1e   :  { %155 = vmatpush.bf16.msra.mxu1 %v593_v15  ;;  %v659_v35 = vor.u32 %v812_v32, %v656_v33  ;;  %v720_v36 = vld [vmem:[#allocation6 + $0xe8] sm:$0xf0]  ;;  %v811_v38 = vld [vmem:[#allocation6 + $0x54] sm:$0xf0]  ;;  %v710_v40 = vld [vmem:[#allocation6 + $0xd0] sm:$0xf] }
  0x1f   :  { %v723_v39 = vor.u32 %v828_v34, %v720_v36  ;;  %v827_v41 = vld [vmem:[#allocation6 + $0xd4] sm:$0xf0]  ;;  %v810_v42 = vld [vmem:[#allocation6 + $0x54] sm:$0xf]  ;;  %v647_v43 = vor.u32 %v811_v38, %v646_v37  ;;  %v648_v44 = vld [vmem:[#allocation6 + $0x58] sm:$0xf0] }
  0x20   :  { %602 = vmatmul.msk.bf16.vlgmr.msra.gmra.mxu0 %vm131_vm0, %v100_v25  ;;  %364 = vmatpush.bf16.msra.mxu2 %v655_v30  ;;  %v826_v45 = vld [vmem:[#allocation6 + $0xd4] sm:$0xf]  ;;  %v712_v46 = vld [vmem:[#allocation6 + $0xd8] sm:$0xf0]  ;;  %v711_v47 = vor.u32 %v827_v41, %v710_v40  ;;  %v638_v48 = vld [vmem:[#allocation6 + $0x40] sm:$0xf]  ;;  %v651_v50 = vor.u32 %v810_v42, %v648_v44 }
  0x21   :  { %389 = vmatpush.bf16.msrb.mxu0 %v667_v21  ;;  %603 = vmatmul.msk.bf16.vlgmr.msra.gmra.mxu1 %vm131_vm0, %v100_v25  ;;  %v809_v49 = vld [vmem:[#allocation6 + $0x44] sm:$0xf0]  ;;  %v702_v51 = vld [vmem:[#allocation6 + $0xc0] sm:$0xf]  ;;  %v715_v53 = vor.u32 %v826_v45, %v712_v46  ;;  %v808_v54 = vld [vmem:[#allocation6 + $0x44] sm:$0xf] }
  0x22   :  { %402 = vmatpush.bf16.msrb.mxu1 %v731_v26  ;;  %377 = vmatpush.bf16.msra.mxu3 %v719_v31  ;;  %v825_v52 = vld [vmem:[#allocation6 + $0xc4] sm:$0xf0]  ;;  %v640_v55 = vld [vmem:[#allocation6 + $0x48] sm:$0xf0]  ;;  %v639_v56 = vor.u32 %v809_v49, %v638_v48  ;;  %v824_v57 = vld [vmem:[#allocation6 + $0xc4] sm:$0xf] }
  0x23   :  { %v704_v58 = vld [vmem:[#allocation6 + $0xc8] sm:$0xf0]  ;;  %v703_v59 = vor.u32 %v825_v52, %v702_v51  ;;  %v630_v60 = vld [vmem:[#allocation6 + $0x30] sm:$0xf]  ;;  %v807_v61 = vld [vmem:[#allocation6 + $0x34] sm:$0xf0]  ;;  %v643_v62 = vor.u32 %v808_v54, %v640_v55 }
  0x24   :  { %365 = vmatpush.bf16.msra.mxu2 %v647_v43  ;;  %v694_v63 = vld [vmem:[#allocation6 + $0xb0] sm:$0xf]  ;;  %v823_v0 = vld [vmem:[#allocation6 + $0xb4] sm:$0xf0]  ;;  %v707_v1 = vor.u32 %v824_v57, %v704_v58  ;;  %v806_v2 = vld [vmem:[#allocation6 + $0x34] sm:$0xf]  ;;  %v631_v4 = vor.u32 %v807_v61, %v630_v60 }
  0x25   :  { %390 = vmatpush.bf16.msrb.mxu0 %v659_v35  ;;  %v632_v3 = vld [vmem:[#allocation6 + $0x38] sm:$0xf0]  ;;  %v822_v5 = vld [vmem:[#allocation6 + $0xb4] sm:$0xf]  ;;  %v695_v7 = vor.u32 %v823_v0, %v694_v63  ;;  %v622_v8 = vld [vmem:[#allocation6 + $0x20] sm:$0xf] }
  0x26   :  { %403 = vmatpush.bf16.msrb.mxu1 %v723_v39  ;;  %378 = vmatpush.bf16.msra.mxu3 %v711_v47  ;;  %v696_v6 = vld [vmem:[#allocation6 + $0xb8] sm:$0xf0]  ;;  %v805_v9 = vld [vmem:[#allocation6 + $0x24] sm:$0xf0]  ;;  %v635_v10 = vor.u32 %v806_v2, %v632_v3  ;;  %v686_v11 = vld [vmem:[#allocation6 + $0xa0] sm:$0xf] }
  0x27   :  { %v821_v12 = vld [vmem:[#allocation6 + $0xa4] sm:$0xf0]  ;;  %v699_v13 = vor.u32 %v822_v5, %v696_v6  ;;  %v804_v14 = vld [vmem:[#allocation6 + $0x24] sm:$0xf]  ;;  %v624_v15 = vld [vmem:[#allocation6 + $0x28] sm:$0xf0]  ;;  %v623_v16 = vor.u32 %v805_v9, %v622_v8 }
  0x28   :  { %366 = vmatpush.bf16.msra.mxu2 %v639_v56  ;;  %v820_v17 = vld [vmem:[#allocation6 + $0xa4] sm:$0xf]  ;;  %v688_v18 = vld [vmem:[#allocation6 + $0xa8] sm:$0xf0]  ;;  %v687_v19 = vor.u32 %v821_v12, %v686_v11  ;;  %v627_v20 = vor.u32 %v804_v14, %v624_v15  ;;  %v614_v22 = vld [vmem:[#allocation6 + $0x10] sm:$0xf] }
  0x29   :  { %391 = vmatpush.bf16.msrb.mxu0 %v651_v50  ;;  %v691_v21 = vor.u32 %v820_v17, %v688_v18  ;;  %v803_v23 = vld [vmem:[#allocation6 + $0x14] sm:$0xf0]  ;;  %v678_v24 = vld [vmem:[#allocation6 + $0x90] sm:$0xf]  ;;  %v802_v27 = vld [vmem:[#allocation6 + $0x14] sm:$0xf] }
  0x2a   :  { %404 = vmatpush.bf16.msrb.mxu1 %v715_v53  ;;  %379 = vmatpush.bf16.msra.mxu3 %v703_v59  ;;  %v615_v25 = vor.u32 %v803_v23, %v614_v22  ;;  %v819_v26 = vld [vmem:[#allocation6 + $0x94] sm:$0xf0]  ;;  %v616_v28 = vld [vmem:[#allocation6 + $0x18] sm:$0xf0]  ;;  %v818_v31 = vld [vmem:[#allocation6 + $0x94] sm:$0xf] }
  0x2b   :  { %v679_v29 = vor.u32 %v819_v26, %v678_v24  ;;  %v619_v30 = vor.u32 %v802_v27, %v616_v28  ;;  %v680_v32 = vld [vmem:[#allocation6 + $0x98] sm:$0xf0]  ;;  %v606_v34 = vld [vmem:[#allocation6] sm:$0xf]  ;;  %v801_v35 = vld [vmem:[#allocation6 + $0x4] sm:$0xf0] }
  0x2c   :  { %367 = vmatpush.bf16.msra.mxu2 %v631_v4  ;;  %v683_v33 = vor.u32 %v818_v31, %v680_v32  ;;  %v670_v36 = vld [vmem:[#allocation6 + $0x80] sm:$0xf]  ;;  %v607_v37 = vor.u32 %v801_v35, %v606_v34  ;;  %v817_v38 = vld [vmem:[#allocation6 + $0x84] sm:$0xf0]  ;;  %v800_v39 = vld [vmem:[#allocation6 + $0x4] sm:$0xf] }
  0x2d   :  { %392 = vmatpush.bf16.msrb.mxu0 %v643_v62  ;;  %v608_v40 = vld [vmem:[#allocation6 + $0x8] sm:$0xf0]  ;;  %v671_v41 = vor.u32 %v817_v38, %v670_v36  ;;  %v816_v43 = vld [vmem:[#allocation6 + $0x84] sm:$0xf]  ;;  %v847_v46 = vld [vmem:[%s1105_s5 + $0x78] sm:$0xff] }
  0x2e   :  { %405 = vmatpush.bf16.msrb.mxu1 %v707_v1  ;;  %380 = vmatpush.bf16.msra.mxu3 %v695_v7  ;;  %v611_v42 = vor.u32 %v800_v39, %v608_v40  ;;  %v672_v44 = vld [vmem:[#allocation6 + $0x88] sm:$0xf0]  ;;  %v839_v47 = vld [vmem:[%s1105_s5 + $0x38] sm:$0xff]  ;;  %v844_v52 = vld [vmem:[%s1105_s5 + $0x60] sm:$0xff] }
  0x2f   :  { %v675_v45 = vor.u32 %v816_v43, %v672_v44  ;;  %v846_v48 = vld [vmem:[%s1105_s5 + $0x70] sm:$0xff]  ;;  %v845_v50 = vld [vmem:[%s1105_s5 + $0x68] sm:$0xff]  ;;  %v836_v53 = vld [vmem:[%s1105_s5 + $0x20] sm:$0xff] }
  0x30   :  { %368 = vmatpush.bf16.msra.mxu2 %v623_v16  ;;  %v838_v49 = vld [vmem:[%s1105_s5 + $0x30] sm:$0xff]  ;;  %v837_v51 = vld [vmem:[%s1105_s5 + $0x28] sm:$0xff]  ;;  %v843_v54 = vld [vmem:[%s1105_s5 + $0x58] sm:$0xff] }
  0x31   :  { %393 = vmatpush.bf16.msrb.mxu0 %v635_v10  ;;  %v105_v55 = vld [vmem:[#allocation4] sm:$0x3]  ;;  %v842_v56 = vld [vmem:[%s1105_s5 + $0x50] sm:$0xff]  ;;  %v835_v5 = vld [vmem:[%s1105_s5 + $0x18] sm:$0xff] }
  0x32   :  { %406 = vmatpush.bf16.msrb.mxu1 %v699_v13  ;;  %381 = vmatpush.bf16.msra.mxu3 %v687_v19  ;;  %v107_v57 = vperm.slane %v105_v55, 0  ;;  %v108_v58 = vperm.slane %v105_v55, 1  ;;  %v841_v6 = vld [vmem:[%s1105_s5 + $0x48] sm:$0xff]  ;;  %v834_v7 = vld [vmem:[%s1105_s5 + $0x10] sm:$0xff]  ;;  %v840_v8 = vld [vmem:[%s1105_s5 + $0x40] sm:$0xff] }
  0x33   :  { %v833_v9 = vld [vmem:[%s1105_s5 + $0x8] sm:$0xff]  ;;  %v832_v10 = vld [vmem:[%s1105_s5] sm:$0xff] }
  0x34   :  { %369 = vmatpush.bf16.msra.mxu2 %v615_v25  ;;  %v197_v11 = vld [vmem:[#allocation7] sm:$0x3]  ;;  %v855_v31 = vld [vmem:[#allocation9] ss:$0 sm:$0xff] }
  0x35   :  { %394 = vmatpush.bf16.msrb.mxu0 %v627_v20  ;;  %v200_v12 = vperm.slane %v197_v11, 1  ;;  %v199_v17 = vperm.slane %v197_v11, 0 }
  0x36   :  { %407 = vmatpush.bf16.msrb.mxu1 %v691_v21  ;;  %382 = vmatpush.bf16.msra.mxu3 %v679_v29 }
  0x38   :  { %370 = vmatpush.bf16.msra.mxu2 %v607_v37 }
  0x39   :  { %395 = vmatpush.bf16.msrb.mxu0 %v619_v30 }
  0x3a   :  { %408 = vmatpush.bf16.msrb.mxu1 %v683_v33  ;;  %383 = vmatpush.bf16.msra.mxu3 %v671_v41 }
  0x3c   :  { %551 = vmatpush.bf16.msrb.mxu2 %v839_v47 }
  0x3d   :  { %396 = vmatpush.bf16.msrb.mxu0 %v611_v42 }
  0x3e   :  { %409 = vmatpush.bf16.msrb.mxu1 %v675_v45  ;;  %564 = vmatpush.bf16.msrb.mxu3 %v847_v46 }
  0x40   :  { %552 = vmatpush.bf16.msrb.mxu2 %v838_v49 }
  0x42   :  { %565 = vmatpush.bf16.msrb.mxu3 %v846_v48 }
  0x44   :  { %553 = vmatpush.bf16.msrb.mxu2 %v837_v51 }
  0x46   :  { %566 = vmatpush.bf16.msrb.mxu3 %v845_v50 }
  0x48   :  { %554 = vmatpush.bf16.msrb.mxu2 %v836_v53 }
  0x4a   :  { %567 = vmatpush.bf16.msrb.mxu3 %v844_v52 }
  0x4c   :  { %555 = vmatpush.bf16.msrb.mxu2 %v835_v5 }
  0x4e   :  { %568 = vmatpush.bf16.msrb.mxu3 %v843_v54 }
  0x50   :  { %556 = vmatpush.bf16.msrb.mxu2 %v834_v7 }
  0x52   :  { %569 = vmatpush.bf16.msrb.mxu3 %v842_v56 }
  0x54   :  { %557 = vmatpush.bf16.msrb.mxu2 %v833_v9 }
  0x56   :  { %570 = vmatpush.bf16.msrb.mxu3 %v841_v6 }
  0x58   :  { %558 = vmatpush.bf16.msrb.mxu2 %v832_v10 }
  0x5a   :  { %571 = vmatpush.bf16.msrb.mxu3 %v840_v8 }
  0x9d   :  { %v144_v59 = vpop.f32.mrf.mxu0 }
  0x9e   :  { %v145_v60 = vadd.f32 %v144_v59, %v107_v57  ;;  %v157_v61 = vpop.f32.mrf.mxu1 }
  0x9f   :  { %v158_v62 = vadd.f32 %v157_v61, %v108_v58 }
  0xa0   :  { %v161_v63 = vmax.f32 %v145_v60, 0.0 }
  0xa1   :  { %v162_v0 = vmax.f32 %v158_v62, 0.0 }
  0xa2   :  { %v163_v1 = vpack.c.bf16 %v161_v63, %v161_v63 }
  0xa3   :  { %v164_v2 = vpack.c.bf16 %v162_v0, %v162_v0 }
  0xa4   :  { %371 = vmatmul.bf16.vlgmr.msra.gmra.mxu2 %v163_v1  ;;  %397 = vmatmul.bf16.vlgmr.msrb.gmra.mxu0 %v163_v1 }
  0xa5   :  { %384 = vmatmul.bf16.vlgmr.msra.gmra.mxu3 %v164_v2  ;;  %410 = vmatmul.bf16.vlgmr.msrb.gmra.mxu1 %v164_v2  ;;  %v146_v3 = vpop.f32.mrf.mxu0 }
  0xa6   :  { %v159_v4 = vpop.f32.mrf.mxu1 }
 0x121   :  { %v398_v13 = vpop.f32.mrf.mxu0 }
 0x122   :  { %v399_v14 = vadd.f32 %v398_v13, %v200_v12  ;;  %v411_v15 = vpop.f32.mrf.mxu1 }
 0x124   :  { %v412_v16 = vadd.f32 %v411_v15, %v399_v14 }
 0x126   :  { %v416_v18 = vmax.f32 %v412_v16, 0.0 }
 0x127   :  { %v372_v19 = vpop.f32.mrf.mxu2 }
 0x128   :  { %v418_v20 = vpack.c.bf16 %v416_v18, %v416_v18  ;;  %v373_v21 = vadd.f32 %v372_v19, %v199_v17  ;;  %v385_v22 = vpop.f32.mrf.mxu3 }
 0x129   :  { %v400_v23 = vpop.f32.mrf.mxu0 }
 0x12a   :  { %v386_v24 = vadd.f32 %v385_v22, %v373_v21  ;;  %v413_v25 = vpop.f32.mrf.mxu1  ;;  %572 = vmatmul.bf16.vlgmr.msrb.gmra.mxu3 %v418_v20 }
 0x12c   :  { %v415_v26 = vmax.f32 %v386_v24, 0.0 }
 0x12e   :  { %v417_v27 = vpack.c.bf16 %v415_v26, %v415_v26 }
 0x12f   :  { %v374_v28 = vpop.f32.mrf.mxu2 }
 0x130   :  { %v387_v29 = vpop.f32.mrf.mxu3  ;;  %559 = vmatmul.bf16.vlgmr.msrb.gmra.mxu2 %v417_v27 }
 0x1ad   :  { %v573_v30 = vpop.f32.mrf.mxu3 }
 0x1b3   :  { %v560_v32 = vpop.f32.mrf.mxu2 }
 0x1b4   :  { %v561_v33 = vadd.f32 %v855_v31, %v560_v32 }
 0x1b5   :  { %v575_v34 = vpop.f32.mrf.mxu3 }
 0x1b6   :  { %v574_v35 = vadd.f32 %v573_v30, %v561_v33 }
 0x1b8   :  { %578 = vst.msk [vmem:[%s1107_s7] sm:$0x3] %vm577_vm1, %v574_v35 }
 0x1bb   :  { %v562_v36 = vpop.f32.mrf.mxu2 }
 0x1bc   :  { %583 = vsyncpa [#allocation3], 1 }
 0x1bd   :  { %584 = vsyncpa [#allocation5], 1 }
 0x1be   :  { %585 = vsyncpa [#allocation8], 1 }

// kernel: mask_decoder_forward.6
= control target key start
LH: loop header
LB: loop body
LE: loop exit
PB: predicated region body
PF: predicated region fallthrough
CT: control target
= control target key end

     0   :  { %s2628_s0 = inlined_call_operand.vmem [shape: bf16[2,64,32], index: 0, kind: input, shape index: {}]   ;;  %s2629_s1 = inlined_call_operand.vmem [shape: bf16[1,64,32], index: 1, kind: input, shape index: {}]   ;;  %s2630_s2 = inlined_call_operand.hbm [shape: bf16[32,32], index: 2, kind: input, shape index: {}]   ;;  %s2631_s3 = inlined_call_operand.hbm [shape: f32[1,32], index: 3, kind: input, shape index: {}]   ;;  %s2632_s4 = inlined_call_operand.hbm [shape: bf16[32,32], index: 4, kind: input, shape index: {}]   ;;  %s2633_s5 = inlined_call_operand.hbm [shape: f32[1,32], index: 5, kind: input, shape index: {}]   ;;  %s2634_s6 = inlined_call_operand.hbm [shape: f32[1,32], index: 6, kind: input, shape index: {}]   ;;  %s2635_s7 = inlined_call_operand.hbm [shape: bf16[32,64], index: 7, kind: input, shape index: {}]   ;;  %s2636_s8 = inlined_call_operand.hbm [shape: f32[1,64], index: 8, kind: input, shape index: {}]   ;;  %s2637_s9 = inlined_call_operand.vmem [shape: bf16[2,64,48], index: 9, kind: input, shape index: {}]   ;;  %s2638_s10 = inlined_call_operand.vmem [shape: bf16[2,64,48], index: 10, kind: output, shape index: {}]  }
   0x1   :  { %2639 = sst [smem:[#allocation17_spill]] %s2630_s2 }
   0x2   :  { %2640 = sst [smem:[#allocation18_spill]] %s2631_s3 }
   0x3   :  { %15 = vsyncpa [#allocation3], 0 }
   0x4   :  { %16 = vsyncpa [#allocation5], 0 }
   0x5   :  { %17 = vsyncpa [#allocation8], 0 }
   0x6   :  { %18 = vsyncpa [#allocation11], 0  ;;  %s2273_s13 = smov 0   ;;  %s2275_s14 = smov 0  }
   0x7   :  { %s2277_s15 = smov 0  }
   0x8 LB: > { %s2641_s3 = sld [smem:[#allocation18_spill]]  ;;  %s1665_s19 = sadd.s32 4294967295, %s2207_s15   ;;  %s2207_s15 = sphi %s2277_s15, %s24_s15   ;;  %s2203_s14 = sphi %s2275_s14, %s2647_s14   ;;  %s2199_s13 = sphi %s2273_s13, %s2646_s13  }
   0x9   : > { %p1667_p0 = scmp.ge.s32.totalorder %s2207_s15, 1  ;;  %p296_p1 = scmp.lt.s32.totalorder %s2207_s15, 3 }
   0xa   : > { %p2294_p2 = scmp.eq.s32.totalorder %s1665_s19, 0  ;;  %s2209_s22 = smov [#allocation4]  }
   0xb   : > { %p2298_p3 = pnand %p1667_p0, %p296_p1  ;;  %s333_s23 = sshll.u32 %s2209_s22, 4  ;;  %s334_s23 = int_to_ptr.vmem [resolvable:$true] %s333_s23 }
   0xc   : > { %s357_s26 = sshll.u32 %s2633_s5, 4  ;;  %s2210_s28 = smov [#allocation7]   ;;  %s358_s26 = int_to_ptr.hbm [resolvable:$true] %s357_s26 }
   0xd   : > { %p1838_p4 = pneg %p2298_p3  ;;  %s359_s29 = sshll.u32 %s2210_s28, 4  ;;  %s360_s29 = int_to_ptr.vmem [resolvable:$true] %s359_s29 }
   0xe   : > { %s331_s18 = sshll.u32 %s2641_s3, 4  ;;  %s380_s12 = sshll.u32 %s2635_s7, 4  ;;  %s332_s18 = int_to_ptr.hbm [resolvable:$true] %s331_s18  ;;  %s381_s12 = int_to_ptr.hbm [resolvable:$true] %s380_s12 }
   0xf   : > { %p2309_p5 = pnand %p2294_p2, %p1838_p4  ;;  %s2211_s16 = smov [#allocation10]  }
  0x10   : > { %s382_s17 = sshll.u32 %s2211_s16, 4  ;;  %s2212_s19 = smov 64   ;;  %s383_s17 = int_to_ptr.vmem [resolvable:$true] %s382_s17 }
  0x11   : > { %1844 = dma.hbm_to_vmem [thread:$0]  (!%p2309_p5), %s332_s18, 16, %s334_s23, [#allocation5]  }
  0x12   : > { %1850 = dma.hbm_to_vmem [thread:$0]  (!%p2309_p5), %s358_s26, 16, %s360_s29, [#allocation8]  }
  0x13   : > { %s2213_s22 = smov 4   ;;  %s36_s24 = sadd.s32 1, %s2203_s14 }
  0x14   : > { %1856 = dma.hbm_to_vmem [thread:$0]  (!%p2309_p5), %s381_s12, 256, %s383_s17, [#allocation11], %s2212_s19, %s2212_s19, %s2213_s22  }
  0x15   : > { %s2645_s2 = sld [smem:[#allocation17_spill]]  ;;  %p38_p6 = scmp.ge.s32.totalorder %s36_s24, 2 }
  0x16   : > { %s342_s26 = sshll.u32 %s2632_s4, 4  ;;  %s2214_s29 = smov [#allocation2]   ;;  %s343_s26 = int_to_ptr.hbm [resolvable:$true] %s342_s26 }
  0x17   : > { %s2649_s24 = smov (%p38_p6, %s36_s24), 0  ;;  %s318_s11 = sshll.u32 %s2214_s29, 4  ;;  %s319_s11 = int_to_ptr.vmem [resolvable:$true] %s318_s11 }
  0x18   : > { %s2215_s12 = smov [#allocation6]   ;;  %s369_s28 = sshll.u32 %s2634_s6, 4  ;;  %s370_s28 = int_to_ptr.hbm [resolvable:$true] %s369_s28 }
  0x19   : > { %s344_s16 = sshll.u32 %s2215_s12, 4  ;;  %s2216_s29 = smov [#allocation9]   ;;  %s345_s16 = int_to_ptr.vmem [resolvable:$true] %s344_s16 }
  0x1a   : > { %1847 = dma.hbm_to_vmem [thread:$0]  (!%p2309_p5), %s343_s26, 256, %s345_s16, [#allocation5], %s2212_s19, %s2212_s19, %s2213_s22  }
  0x1b   : > { %s316_s30 = sshll.u32 %s2645_s2, 4  ;;  %s395_s2 = sshll.u32 %s2636_s8, 4  ;;  %s317_s30 = int_to_ptr.hbm [resolvable:$true] %s316_s30  ;;  %s396_s2 = int_to_ptr.hbm [resolvable:$true] %s395_s2 }
  0x1c   : > { %1841 = dma.hbm_to_vmem [thread:$0]  (!%p2309_p5), %s317_s30, 256, %s319_s11, [#allocation3], %s2212_s19, %s2212_s19, %s2213_s22  }
  0x1d   : > { %s371_s3 = sshll.u32 %s2216_s29, 4  ;;  %s2217_s30 = smov [#allocation12]   ;;  %s372_s3 = int_to_ptr.vmem [resolvable:$true] %s371_s3 }
  0x1e   : > { %1853 = dma.hbm_to_vmem [thread:$0]  (!%p2309_p5), %s370_s28, 16, %s372_s3, [#allocation8]  }
  0x1f   : > { %s397_s11 = sshll.u32 %s2217_s30, 4  ;;  %431 = sbr.rel (%p2298_p3) target bundleno = 949 (0x3b5), region = 60  ;;  %s398_s11 = int_to_ptr.vmem [resolvable:$true] %s397_s11 }
  0x20   : > { %1859 = dma.hbm_to_vmem [thread:$0]  (!%p2309_p5), %s396_s2, 16, %s398_s11, [#allocation11]  }
  0x24   : > { %2182 = dma.done.wait (%p2294_p2), [#allocation3], 256  }
  0x25   : > { %2184 = vsyncadd (%p2294_p2), [#allocation3], 4294967040 }
  0x26   : > { %2186 = dma.done.wait (%p2294_p2), [#allocation5], 272  }
  0x27   : > { %2188 = vsyncadd (%p2294_p2), [#allocation5], 4294967024 }
  0x28   : > { %2190 = dma.done.wait (%p2294_p2), [#allocation8], 32  }
  0x29   : > { %2192 = vsyncadd (%p2294_p2), [#allocation8], 4294967264 }
  0x2a   : > { %2194 = dma.done.wait (%p2294_p2), [#allocation11], 272  }
  0x2b   : > { %2196 = vsyncadd (%p2294_p2), [#allocation11], 4294967024  ;;  %p519_p7 = scmp.lt.s32.totalorder %s2199_s13, 1  ;;  %v1757_v0 = vld [vmem:[#allocation2 + $0x8] sm:$0xff]  ;;  %v1756_v1 = vld [vmem:[#allocation2] sm:$0xff]  ;;  %vm614_vm0 = vcmask 261120  }
  0x2c   : > { %v1783_v5 = vld [vmem:[%s2629_s1] sm:$0xff]   ;;  %v1801_v7 = vld [vmem:[%s2629_s1 + $0x8] sm:$0xff]   ;;  %633 = vmatpush.bf16.msra.mxu0 %v1757_v0  ;;  %1804 = vmatpush.bf16.msra.mxu1 %v1757_v0  ;;  %v1802_v13 = vld [vmem:[%s2629_s1 + $0x10] sm:$0xff]  }
  0x2d   : > { %s2651_s13 = smov (!%p519_p7, %s2199_s13), 1  ;;  %v1784_v8 = vunpack.c.l.bf16 %v1783_v5  ;;  %v1785_v9 = vunpack.c.h.bf16 %v1783_v5  ;;  %v1788_v15 = vunpack.c.l.bf16 %v1801_v7  ;;  %v1789_v16 = vunpack.c.h.bf16 %v1801_v7  ;;  %1805 = vmatpush.bf16.msra.mxu2 %v1757_v0  ;;  %1806 = vmatpush.bf16.msra.mxu3 %v1757_v0  ;;  %v1803_v19 = vld [vmem:[%s2629_s1 + $0x18] sm:$0xff]   ;;  %v1907_v41 = vld [vmem:[#allocation4] ss:$0 sm:$0xff] }
  0x2e   : > { %s2365_s2 = sshll.u32 %s2651_s13, 5  ;;  %v1792_v22 = vunpack.c.l.bf16 %v1802_v13  ;;  %v1793_v23 = vunpack.c.h.bf16 %v1802_v13  ;;  %v1759_v24 = vld [vmem:[#allocation6 + $0x8] sm:$0xff]  ;;  %v1796_v32 = vunpack.c.l.bf16 %v1803_v19  ;;  %v1797_v34 = vunpack.c.h.bf16 %v1803_v19  ;;  %v1758_v39 = vld [vmem:[#allocation6] sm:$0xff] }
  0x2f   : > { %s526_s27 = scalar_lea.vmem %s2628_s0, %s2365_s2  ;;  %s2548_s18 = scalar_lea.vmem %s2637_s9, %s2365_s2 }
  0x30   : > { %v1767_v2 = vld [vmem:[%s526_s27] sm:$0xff]   ;;  %v1798_v6 = vld [vmem:[%s526_s27 + $0x8] sm:$0xff]   ;;  %v1799_v12 = vld [vmem:[%s526_s27 + $0x10] sm:$0xff]   ;;  %634 = vmatpush.bf16.msra.mxu0 %v1756_v1  ;;  %1807 = vmatpush.bf16.msra.mxu1 %v1756_v1  ;;  %s547_s30 = scalar_lea.vmem %s2638_s10, %s2365_s2 }
  0x31   : > { %v1768_v3 = vunpack.c.l.bf16 %v1767_v2  ;;  %v1769_v4 = vunpack.c.h.bf16 %v1767_v2  ;;  %v1772_v10 = vunpack.c.l.bf16 %v1798_v6  ;;  %v1773_v11 = vunpack.c.h.bf16 %v1798_v6  ;;  %v1800_v14 = vld [vmem:[%s526_s27 + $0x18] sm:$0xff]   ;;  %1808 = vmatpush.bf16.msra.mxu2 %v1756_v1  ;;  %1809 = vmatpush.bf16.msra.mxu3 %v1756_v1 }
  0x32   : > { %v1776_v17 = vunpack.c.l.bf16 %v1799_v12  ;;  %v1777_v18 = vunpack.c.h.bf16 %v1799_v12  ;;  %v1780_v27 = vunpack.c.l.bf16 %v1800_v14  ;;  %v1781_v28 = vunpack.c.h.bf16 %v1800_v14 }
  0x33   : > { %v582_v20 = vadd.f32 %v1784_v8, %v1768_v3  ;;  %v583_v21 = vadd.f32 %v1785_v9, %v1769_v4  ;;  %v584_v25 = vadd.f32 %v1788_v15, %v1772_v10  ;;  %v585_v26 = vadd.f32 %v1789_v16, %v1773_v11 }
  0x34   : > { %v586_v30 = vadd.f32 %v1792_v22, %v1776_v17  ;;  %v587_v31 = vadd.f32 %v1793_v23, %v1777_v18  ;;  %v588_v36 = vadd.f32 %v1796_v32, %v1780_v27  ;;  %694 = vmatpush.bf16.msrb.mxu1 %v1759_v24  ;;  %v589_v37 = vadd.f32 %v1797_v34, %v1781_v28 }
  0x35   : > { %v590_v29 = vpack.c.bf16 %v583_v21, %v582_v20  ;;  %v591_v33 = vpack.c.bf16 %v585_v26, %v584_v25  ;;  %755 = vmatpush.bf16.msrb.mxu2 %v1759_v24 }
  0x36   : > { %v592_v35 = vpack.c.bf16 %v587_v31, %v586_v30  ;;  %v593_v38 = vpack.c.bf16 %v589_v37, %v588_v36 }
  0x37   : > { %1699 = vmatmul.msk.bf16.vlgmr.msra.gmra.mxu0 %vm614_vm0, %v590_v29  ;;  %1700 = vmatmul.msk.bf16.vlgmr.msra.gmra.mxu1 %vm614_vm0, %v591_v33 }
  0x38   : > { %1701 = vmatmul.msk.bf16.vlgmr.msra.gmra.mxu2 %vm614_vm0, %v592_v35  ;;  %1702 = vmatmul.msk.bf16.vlgmr.msra.gmra.mxu3 %vm614_vm0, %v593_v38 }
  0x39   : > { %695 = vmatpush.bf16.msrb.mxu1 %v1758_v39  ;;  %756 = vmatpush.bf16.msrb.mxu2 %v1758_v39  ;;  %v2423_v39 = vld [vmem:[#allocation7] ss:$0 sm:$0xff] }
  0xb4   : > { %v636_v40 = vpop.f32.mrf.mxu0  ;;  %v641_v45 = vpop.f32.mrf.mxu1 }
  0xb5   : > { %v637_v43 = vadd.f32 %v1907_v41, %v636_v40  ;;  %v642_v48 = vadd.f32 %v1907_v41, %v641_v45 }
  0xbb   : > { %v646_v50 = vpop.f32.mrf.mxu2  ;;  %v651_v55 = vpop.f32.mrf.mxu3 }
  0xbc   : > { %v638_v42 = vpop.f32.mrf.mxu0  ;;  %v643_v47 = vpop.f32.mrf.mxu1  ;;  %v647_v53 = vadd.f32 %v1907_v41, %v646_v50  ;;  %v652_v58 = vadd.f32 %v1907_v41, %v651_v55 }
  0xbd   : > { %v639_v44 = vadd.f32 %v1907_v41, %v638_v42  ;;  %v644_v49 = vadd.f32 %v1907_v41, %v643_v47 }
  0xbf   : > { %v656_v46 = vpack.c.bf16 %v639_v44, %v637_v43  ;;  %v657_v51 = vpack.c.bf16 %v644_v49, %v642_v48 }
  0xc1   : > { %1711 = vmatmul.msk.bf16.vlgmr.msrb.gmra.mxu1 %vm614_vm0, %v656_v46 }
  0xc3   : > { %v648_v52 = vpop.f32.mrf.mxu2  ;;  %v653_v57 = vpop.f32.mrf.mxu3 }
  0xc4   : > { %v649_v54 = vadd.f32 %v1907_v41, %v648_v52  ;;  %v654_v59 = vadd.f32 %v1907_v41, %v653_v57 }
  0xc6   : > { %v658_v56 = vpack.c.bf16 %v649_v54, %v647_v53  ;;  %v659_v60 = vpack.c.bf16 %v654_v59, %v652_v58 }
  0xd1   : > { %1712 = vmatmul.msk.bf16.gmra.mxu1 %vm614_vm0, %v657_v51 }
  0xe1   : > { %1713 = vmatmul.msk.bf16.gmra.mxu1 %vm614_vm0, %v658_v56 }
  0xf1   : > { %1714 = vmatmul.msk.bf16.gmra.mxu1 %vm614_vm0, %v659_v60 }
 0x13e   : > { %v697_v61 = vpop.f32.mrf.mxu1 }
 0x13f   : > { %v717_v62 = vsub.f32 %v637_v43, %v697_v61  ;;  %v2425_v43 = vld [vmem:[#allocation9] ss:$0 sm:$0xff] }
 0x141   : > { %v725_v1 = vmul.f32 %v717_v62, %v717_v62 }
 0x146   : > { %v699_v63 = vpop.f32.mrf.mxu1 }
 0x147   : > { %v2391_v0 = vsub.f32 %v639_v44, %v699_v63 }
 0x149   : > { %v726_v2 = vmul.f32 %v2391_v0, %v2391_v0 }
 0x14b   : > { %v733_v3 = vpack.c.bf16 %v726_v2, %v725_v1 }
 0x14d   : > { %1715 = vmatmul.msk.bf16.vlgmr.msrb.gmra.mxu2 %vm614_vm0, %v733_v3 }
 0x14e   : > { %v702_v4 = vpop.f32.mrf.mxu1 }
 0x14f   : > { %v2396_v5 = vsub.f32 %v642_v48, %v702_v4 }
 0x151   : > { %v727_v8 = vmul.f32 %v2396_v5, %v2396_v5 }
 0x156   : > { %v704_v6 = vpop.f32.mrf.mxu1 }
 0x157   : > { %v2398_v7 = vsub.f32 %v644_v49, %v704_v6 }
 0x159   : > { %v728_v9 = vmul.f32 %v2398_v7, %v2398_v7 }
 0x15b   : > { %v734_v10 = vpack.c.bf16 %v728_v9, %v727_v8 }
 0x15d   : > { %1716 = vmatmul.msk.bf16.gmra.mxu2 %vm614_vm0, %v734_v10 }
 0x15e   : > { %v707_v11 = vpop.f32.mrf.mxu1 }
 0x15f   : > { %v2405_v12 = vsub.f32 %v647_v53, %v707_v11 }
 0x161   : > { %v729_v15 = vmul.f32 %v2405_v12, %v2405_v12 }
 0x166   : > { %v709_v13 = vpop.f32.mrf.mxu1 }
 0x167   : > { %v2407_v14 = vsub.f32 %v649_v54, %v709_v13 }
 0x169   : > { %v730_v16 = vmul.f32 %v2407_v14, %v2407_v14 }
 0x16b   : > { %v735_v17 = vpack.c.bf16 %v730_v16, %v729_v15 }
 0x16d   : > { %1717 = vmatmul.msk.bf16.gmra.mxu2 %vm614_vm0, %v735_v17 }
 0x16e   : > { %v712_v18 = vpop.f32.mrf.mxu1 }
 0x16f   : > { %v2414_v19 = vsub.f32 %v652_v58, %v712_v18 }
 0x171   : > { %v731_v22 = vmul.f32 %v2414_v19, %v2414_v19 }
 0x176   : > { %v714_v20 = vpop.f32.mrf.mxu1 }
 0x177   : > { %v2416_v21 = vsub.f32 %v654_v59, %v714_v20 }
 0x179   : > { %v732_v23 = vmul.f32 %v2416_v21, %v2416_v21 }
 0x17b   : > { %v736_v24 = vpack.c.bf16 %v732_v23, %v731_v22 }
 0x17d   : > { %1718 = vmatmul.msk.bf16.gmra.mxu2 %vm614_vm0, %v736_v24 }
 0x1d0   : > { %v758_v25 = vpop.f32.mrf.mxu2 }
 0x1d1   : > { %v759_v26 = vadd.f32 1e-06, %v758_v25 }
 0x1d3   : > { %1911 = vrsqrt.f32 %v759_v26  ;;  %vm784_vm2 = vweird.f32 %v759_v26 }
 0x1d8   : > { %v760_v27 = vpop.f32.mrf.mxu2 }
 0x1d9   : > { %v1912_v28 = vpop.eup %1911  ;;  %v761_v29 = vadd.f32 1e-06, %v760_v27 }
 0x1da   : > { %v779_v30 = vmul.f32 %v1912_v28, %v759_v26  ;;  %vm785_vm1 = vweird.f32 %v1912_v28 }
 0x1db   : > { %1913 = vrsqrt.f32 %v761_v29  ;;  %vm786_vm3 = vmor %vm784_vm2, %vm785_vm1  ;;  %vm794_vm5 = vweird.f32 %v761_v29 }
 0x1dc   : > { %v780_v31 = vmul.f32 %v1912_v28, %v779_v30 }
 0x1de   : > { %v781_v32 = vmul.f32 0.5, %v780_v31 }
 0x1e0   : > { %v782_v33 = vsub.f32 1.5, %v781_v32  ;;  %v763_v34 = vpop.f32.mrf.mxu2 }
 0x1e1   : > { %v1914_v35 = vpop.eup %1913  ;;  %v764_v36 = vadd.f32 1e-06, %v763_v34 }
 0x1e2   : > { %v783_v37 = vmul.f32 %v1912_v28, %v782_v33  ;;  %v789_v38 = vmul.f32 %v1914_v35, %v761_v29  ;;  %vm795_vm4 = vweird.f32 %v1914_v35 }
 0x1e3   : > { %1915 = vrsqrt.f32 %v764_v36  ;;  %vm796_vm6 = vmor %vm794_vm5, %vm795_vm4  ;;  %vm804_vm8 = vweird.f32 %v764_v36 }
 0x1e4   : > { %v787_v40 = vsel %vm786_vm3, %v1912_v28, %v783_v37  ;;  %v790_v41 = vmul.f32 %v1914_v35, %v789_v38 }
 0x1e5   : > { %v858_v42 = vmul.f32 %v787_v40, %v717_v62 }
 0x1e6   : > { %v791_v44 = vmul.f32 0.5, %v790_v41 }
 0x1e7   : > { %v870_v45 = vmul.f32 %v2423_v39, %v858_v42 }
 0x1e8   : > { %v792_v46 = vsub.f32 1.5, %v791_v44  ;;  %v765_v47 = vpop.f32.mrf.mxu2 }
 0x1e9   : > { %v1916_v48 = vpop.eup %1915  ;;  %v882_v49 = vadd.f32 %v2425_v43, %v870_v45  ;;  %v766_v50 = vadd.f32 1e-06, %v765_v47 }
 0x1ea   : > { %v793_v51 = vmul.f32 %v1914_v35, %v792_v46  ;;  %v799_v52 = vmul.f32 %v1916_v48, %v764_v36  ;;  %vm805_vm7 = vweird.f32 %v1916_v48 }
 0x1eb   : > { %v890_v53 = vpack.c.bf16 %v882_v49, %v882_v49  ;;  %1917 = vrsqrt.f32 %v766_v50  ;;  %vm806_vm9 = vmor %vm804_vm8, %vm805_vm7  ;;  %vm814_vm11 = vweird.f32 %v766_v50 }
 0x1ec   : > { %v797_v54 = vsel %vm796_vm6, %v1914_v35, %v793_v51  ;;  %v800_v55 = vmul.f32 %v1916_v48, %v799_v52 }
 0x1ed   : > { %v2429_v56 = vunpack.c.l.bf16 %v890_v53  ;;  %v859_v57 = vmul.f32 %v797_v54, %v2391_v0 }
 0x1ee   : > { %v801_v58 = vmul.f32 0.5, %v800_v55 }
 0x1ef   : > { %v906_v59 = vmul.f32 %v2429_v56, %v2429_v56  ;;  %v871_v60 = vmul.f32 %v2423_v39, %v859_v57 }
 0x1f0   : > { %v802_v61 = vsub.f32 1.5, %v801_v58  ;;  %v768_v62 = vpop.f32.mrf.mxu2 }
 0x1f1   : > { %v1918_v63 = vpop.eup %1917  ;;  %v914_v1 = vpack.c.bf16 %v906_v59, %v906_v59  ;;  %v883_v2 = vadd.f32 %v2425_v43, %v871_v60  ;;  %v769_v3 = vadd.f32 1e-06, %v768_v62 }
 0x1f2   : > { %v803_v4 = vmul.f32 %v1916_v48, %v802_v61  ;;  %v809_v6 = vmul.f32 %v1918_v63, %v766_v50  ;;  %vm815_vm10 = vweird.f32 %v1918_v63 }
 0x1f3   : > { %v922_v8 = vunpack.c.l.bf16 %v914_v1  ;;  %v891_v9 = vpack.c.bf16 %v883_v2, %v883_v2  ;;  %1919 = vrsqrt.f32 %v769_v3  ;;  %vm816_vm12 = vmor %vm814_vm11, %vm815_vm10  ;;  %vm824_vm14 = vweird.f32 %v769_v3 }
 0x1f4   : > { %v807_v0 = vsel %vm806_vm9, %v1916_v48, %v803_v4  ;;  %v810_v10 = vmul.f32 %v1918_v63, %v809_v6  ;;  %vm1473_vm10 = vcmask 388096  }
 0x1f5   : > { %v930_v11 = vmul.f32 %v922_v8, %v2429_v56  ;;  %v2437_v13 = vunpack.c.l.bf16 %v891_v9  ;;  %v860_v15 = vmul.f32 %v807_v0, %v2396_v5  ;;  %v1761_v8 = vld [vmem:[#allocation10 + $0x8] sm:$0xff] }
 0x1f6   : > { %v811_v16 = vmul.f32 0.5, %v810_v10  ;;  %1148 = vmatpush.bf16.msrb.mxu3 %v1761_v8 }
 0x1f7   : > { %v938_v17 = vpack.c.bf16 %v930_v11, %v930_v11  ;;  %v907_v18 = vmul.f32 %v2437_v13, %v2437_v13  ;;  %v872_v20 = vmul.f32 %v2423_v39, %v860_v15 }
 0x1f8   : > { %v812_v22 = vsub.f32 1.5, %v811_v16  ;;  %v770_v23 = vpop.f32.mrf.mxu2 }
 0x1f9   : > { %v1920_v24 = vpop.eup %1919  ;;  %v915_v25 = vpack.c.bf16 %v907_v18, %v907_v18  ;;  %v884_v26 = vadd.f32 %v2425_v43, %v872_v20  ;;  %v2444_v27 = vadd.f32 1e-06, %v770_v23  ;;  %v946_v28 = vunpack.c.l.bf16 %v938_v17 }
 0x1fa   : > { %v813_v29 = vmul.f32 %v1918_v63, %v812_v22  ;;  %v819_v5 = vmul.f32 %v1920_v24, %v769_v3  ;;  %vm825_vm13 = vweird.f32 %v1920_v24 }
 0x1fb   : > { %v923_v30 = vunpack.c.l.bf16 %v915_v25  ;;  %v892_v31 = vpack.c.bf16 %v884_v26, %v884_v26  ;;  %1921 = vrsqrt.f32 %v2444_v27  ;;  %v954_v34 = vmul.f32 0.044677734, %v946_v28  ;;  %vm826_vm15 = vmor %vm824_vm14, %vm825_vm13  ;;  %v1760_v28 = vld [vmem:[#allocation10] sm:$0xff] }
 0x1fc   : > { %v817_v32 = vsel %vm816_vm12, %v1918_v63, %v813_v29  ;;  %v820_v33 = vmul.f32 %v1920_v24, %v819_v5  ;;  %vm834_vm2 = vweird.f32 %v2444_v27  ;;  %1149 = vmatpush.bf16.msrb.mxu3 %v1760_v28 }
 0x1fd   : > { %v931_v35 = vmul.f32 %v923_v30, %v2437_v13  ;;  %v861_v36 = vmul.f32 %v817_v32, %v2398_v7  ;;  %v2449_v37 = vunpack.c.l.bf16 %v892_v31  ;;  %v962_v40 = vpack.c.bf16 %v954_v34, %v954_v34 }
 0x1fe   : > { %v821_v38 = vmul.f32 0.5, %v820_v33 }
 0x1ff   : > { %v939_v41 = vpack.c.bf16 %v931_v35, %v931_v35  ;;  %v873_v42 = vmul.f32 %v2423_v39, %v861_v36  ;;  %v908_v44 = vmul.f32 %v2449_v37, %v2449_v37  ;;  %v970_v47 = vunpack.c.l.bf16 %v962_v40 }
 0x200   : > { %v822_v45 = vsub.f32 1.5, %v821_v38  ;;  %v773_v46 = vpop.f32.mrf.mxu2 }
 0x201   : > { %v1922_v48 = vpop.eup %1921  ;;  %v885_v49 = vadd.f32 %v2425_v43, %v873_v42  ;;  %v2455_v50 = vadd.f32 1e-06, %v773_v46  ;;  %v947_v7 = vunpack.c.l.bf16 %v939_v41  ;;  %v916_v51 = vpack.c.bf16 %v908_v44, %v908_v44 }
 0x202   : > { %v823_v52 = vmul.f32 %v1920_v24, %v822_v45  ;;  %v829_v53 = vmul.f32 %v1922_v48, %v2444_v27  ;;  %v978_v54 = vadd.f32 %v970_v47, %v2429_v56  ;;  %vm835_vm1 = vweird.f32 %v1922_v48 }
 0x203   : > { %v893_v55 = vpack.c.bf16 %v885_v49, %v885_v49  ;;  %1923 = vrsqrt.f32 %v2455_v50  ;;  %v955_v57 = vmul.f32 0.044677734, %v947_v7  ;;  %v924_v61 = vunpack.c.l.bf16 %v916_v51  ;;  %vm836_vm3 = vmor %vm834_vm2, %vm835_vm1 }
 0x204   : > { %v827_v58 = vsel %vm826_vm15, %v1920_v24, %v823_v52  ;;  %v830_v59 = vmul.f32 %v1922_v48, %v829_v53  ;;  %v986_v60 = vpack.c.bf16 %v978_v54, %v978_v54  ;;  %vm844_vm5 = vweird.f32 %v2455_v50 }
 0x205   : > { %v862_v62 = vmul.f32 %v827_v58, %v2405_v12  ;;  %v963_v63 = vpack.c.bf16 %v955_v57, %v955_v57  ;;  %v2461_v1 = vunpack.c.l.bf16 %v893_v55  ;;  %v932_v4 = vmul.f32 %v924_v61, %v2449_v37 }
 0x206   : > { %v831_v2 = vmul.f32 0.5, %v830_v59  ;;  %v994_v3 = vunpack.c.l.bf16 %v986_v60 }
 0x207   : > { %v874_v6 = vmul.f32 %v2423_v39, %v862_v62  ;;  %v971_v9 = vunpack.c.l.bf16 %v963_v63  ;;  %v909_v0 = vmul.f32 %v2461_v1, %v2461_v1  ;;  %v940_v16 = vpack.c.bf16 %v932_v4, %v932_v4 }
 0x208   : > { %v832_v10 = vsub.f32 1.5, %v831_v2  ;;  %v775_v11 = vpop.f32.mrf.mxu2  ;;  %v1002_v15 = vmul.f32 0.796875, %v994_v3 }
 0x209   : > { %v1924_v12 = vpop.eup %1923  ;;  %v886_v17 = vadd.f32 %v2425_v43, %v874_v6  ;;  %v2468_v18 = vadd.f32 1e-06, %v775_v11  ;;  %v979_v20 = vadd.f32 %v971_v9, %v2437_v13  ;;  %v917_v22 = vpack.c.bf16 %v909_v0, %v909_v0 }
 0x20a   : > { %v833_v23 = vmul.f32 %v1922_v48, %v832_v10  ;;  %v839_v24 = vmul.f32 %v1924_v12, %v2455_v50  ;;  %v1010_v25 = vpack.c.bf16 %v1002_v15, %v1002_v15  ;;  %v948_v35 = vunpack.c.l.bf16 %v940_v16 }
 0x20b   : > { %v894_v26 = vpack.c.bf16 %v886_v17, %v886_v17  ;;  %1925 = vrsqrt.f32 %v2468_v18  ;;  %v987_v29 = vpack.c.bf16 %v979_v20, %v979_v20  ;;  %v925_v32 = vunpack.c.l.bf16 %v917_v22 }
 0x20c   : > { %v837_v5 = vsel %vm836_vm3, %v1922_v48, %v833_v23  ;;  %v840_v30 = vmul.f32 %v1924_v12, %v839_v24  ;;  %v1018_v31 = vunpack.c.l.bf16 %v1010_v25  ;;  %v956_v42 = vmul.f32 0.044677734, %v948_v35 }
 0x20d   : > { %v863_v33 = vmul.f32 %v837_v5, %v2407_v14  ;;  %v995_v34 = vunpack.c.l.bf16 %v987_v29  ;;  %v2476_v27 = vunpack.c.l.bf16 %v894_v26  ;;  %v933_v38 = vmul.f32 %v925_v32, %v2461_v1 }
 0x20e   : > { %v841_v36 = vmul.f32 0.5, %v840_v30  ;;  %1927 = vtanh.f32 %v1018_v31  ;;  %vm845_vm4 = vweird.f32 %v1924_v12  ;;  %v964_v49 = vpack.c.bf16 %v956_v42, %v956_v42 }
 0x20f   : > { %v875_v40 = vmul.f32 %v2423_v39, %v863_v33  ;;  %v1003_v41 = vmul.f32 0.796875, %v995_v34  ;;  %v910_v44 = vmul.f32 %v2476_v27, %v2476_v27  ;;  %v941_v46 = vpack.c.bf16 %v933_v38, %v933_v38  ;;  %vm846_vm6 = vmor %vm844_vm5, %vm845_vm4 }
 0x210   : > { %v842_v45 = vsub.f32 1.5, %v841_v36  ;;  %v972_v57 = vunpack.c.l.bf16 %v964_v49  ;;  %vm854_vm8 = vweird.f32 %v2468_v18 }
 0x211   : > { %v1926_v14 = vpop.eup %1925  ;;  %v887_v47 = vadd.f32 %v2425_v43, %v875_v40  ;;  %v1011_v48 = vpack.c.bf16 %v1003_v41, %v1003_v41  ;;  %v918_v7 = vpack.c.bf16 %v910_v44, %v910_v44  ;;  %v949_v53 = vunpack.c.l.bf16 %v941_v46 }
 0x212   : > { %v843_v51 = vmul.f32 %v1924_v12, %v842_v45  ;;  %v849_v52 = vmul.f32 %v1926_v14, %v2468_v18  ;;  %v980_v3 = vadd.f32 %v972_v57, %v2449_v37  ;;  %vm855_vm7 = vweird.f32 %v1926_v14 }
 0x213   : > { %v895_v54 = vpack.c.bf16 %v887_v47, %v887_v47  ;;  %v1019_v55 = vunpack.c.l.bf16 %v1011_v48  ;;  %v926_v58 = vunpack.c.l.bf16 %v918_v7  ;;  %v957_v62 = vmul.f32 0.044677734, %v949_v53  ;;  %vm856_vm9 = vmor %vm854_vm8, %vm855_vm7 }
 0x214   : > { %v1928_v59 = vpop.eup %1927  ;;  %v847_v60 = vsel %vm846_vm6, %v1924_v12, %v843_v51  ;;  %v850_v61 = vmul.f32 %v1926_v14, %v849_v52  ;;  %v988_v10 = vpack.c.bf16 %v980_v3, %v980_v3 }
 0x215   : > { %v864_v63 = vmul.f32 %v847_v60, %v2414_v19  ;;  %1929 = vtanh.f32 %v1019_v55  ;;  %v1034_v2 = vpack.c.bf16 %v1928_v59, %v1928_v59  ;;  %v965_v50 = vpack.c.bf16 %v957_v62, %v957_v62 }
 0x216   : > { %v851_v4 = vmul.f32 0.5, %v850_v61  ;;  %v2487_v6 = vunpack.c.l.bf16 %v895_v54  ;;  %v934_v8 = vmul.f32 %v926_v58, %v2476_v27  ;;  %v996_v20 = vunpack.c.l.bf16 %v988_v10 }
 0x217   : > { %v876_v9 = vmul.f32 %v2423_v39, %v864_v63  ;;  %v1042_v0 = vunpack.c.l.bf16 %v1034_v2  ;;  %v973_v15 = vunpack.c.l.bf16 %v965_v50 }
 0x218   : > { %v852_v11 = vsub.f32 1.5, %v851_v4  ;;  %v911_v19 = vmul.f32 %v2487_v6, %v2487_v6  ;;  %v942_v16 = vpack.c.bf16 %v934_v8, %v934_v8  ;;  %v1004_v5 = vmul.f32 0.796875, %v996_v20 }
 0x219   : > { %v888_v12 = vadd.f32 %v2425_v43, %v876_v9  ;;  %v1050_v17 = vadd.f32 1.0, %v1042_v0  ;;  %v981_v23 = vadd.f32 %v973_v15, %v2461_v1 }
 0x21a   : > { %v853_v22 = vmul.f32 %v1926_v14, %v852_v11  ;;  %v919_v24 = vpack.c.bf16 %v911_v19, %v911_v19  ;;  %v950_v25 = vunpack.c.l.bf16 %v942_v16  ;;  %v1012_v35 = vpack.c.bf16 %v1004_v5, %v1004_v5 }
 0x21b   : > { %v1930_v26 = vpop.eup %1929  ;;  %v896_v28 = vpack.c.bf16 %v888_v12, %v888_v12  ;;  %v1058_v29 = vpack.c.bf16 %v1050_v17, %v1050_v17  ;;  %v989_v32 = vpack.c.bf16 %v981_v23, %v981_v23 }
 0x21c   : > { %v857_v30 = vsel %vm856_vm9, %v1926_v14, %v853_v22  ;;  %v1035_v31 = vpack.c.bf16 %v1930_v26, %v1930_v26  ;;  %v927_v33 = vunpack.c.l.bf16 %v919_v24  ;;  %v958_v36 = vmul.f32 0.044677734, %v950_v25 }
 0x21d   : > { %v865_v34 = vmul.f32 %v857_v30, %v2416_v21  ;;  %v1066_v18 = vunpack.c.l.bf16 %v1058_v29  ;;  %v997_v40 = vunpack.c.l.bf16 %v989_v32  ;;  %v2499_v42 = vunpack.c.l.bf16 %v896_v28 }
 0x21e   : > { %v1043_v38 = vunpack.c.l.bf16 %v1035_v31  ;;  %v935_v41 = vmul.f32 %v927_v33, %v2487_v6  ;;  %v1020_v46 = vunpack.c.l.bf16 %v1012_v35  ;;  %v966_v47 = vpack.c.bf16 %v958_v36, %v958_v36 }
 0x21f   : > { %v877_v44 = vmul.f32 %v2423_v39, %v865_v34  ;;  %v1074_v45 = vmul.f32 0.5, %v1066_v18  ;;  %v1005_v48 = vmul.f32 0.796875, %v997_v40  ;;  %v912_v21 = vmul.f32 %v2499_v42, %v2499_v42 }
 0x220   : > { %v1051_v14 = vadd.f32 1.0, %v1043_v38  ;;  %v943_v49 = vpack.c.bf16 %v935_v41, %v935_v41  ;;  %1931 = vtanh.f32 %v1020_v46  ;;  %v974_v51 = vunpack.c.l.bf16 %v966_v47 }
 0x221   : > { %v889_v7 = vadd.f32 %v2425_v43, %v877_v44  ;;  %v1013_v53 = vpack.c.bf16 %v1005_v48, %v1005_v48  ;;  %v920_v55 = vpack.c.bf16 %v912_v21, %v912_v21  ;;  %v1082_v58 = vpack.c.bf16 %v1074_v45, %v1074_v45 }
 0x222   : > { %v1059_v52 = vpack.c.bf16 %v1051_v14, %v1051_v14  ;;  %v951_v54 = vunpack.c.l.bf16 %v943_v49  ;;  %v982_v39 = vadd.f32 %v974_v51, %v2476_v27 }
 0x223   : > { %v897_v57 = vpack.c.bf16 %v889_v7, %v889_v7  ;;  %v1021_v60 = vunpack.c.l.bf16 %v1013_v53  ;;  %v928_v62 = vunpack.c.l.bf16 %v920_v55  ;;  %v1090_v9 = vunpack.c.l.bf16 %v1082_v58 }
 0x224   : > { %v1067_v59 = vunpack.c.l.bf16 %v1059_v52  ;;  %v959_v61 = vmul.f32 0.044677734, %v951_v54  ;;  %v990_v2 = vpack.c.bf16 %v982_v39, %v982_v39 }
 0x225   : > { %v2506_v63 = vunpack.c.l.bf16 %v897_v57  ;;  %1933 = vtanh.f32 %v1021_v60  ;;  %v936_v4 = vmul.f32 %v928_v62, %v2499_v42  ;;  %v1098_v25 = vmul.f32 %v1090_v9, %v2429_v56 }
 0x226   : > { %v1075_v3 = vmul.f32 0.5, %v1067_v59  ;;  %v967_v43 = vpack.c.bf16 %v959_v61, %v959_v61  ;;  %v1932_v50 = vpop.eup %1931  ;;  %v998_v0 = vunpack.c.l.bf16 %v990_v2 }
 0x227   : > { %v913_v8 = vmul.f32 %v2506_v63, %v2506_v63  ;;  %v1036_v11 = vpack.c.bf16 %v1932_v50, %v1932_v50  ;;  %v944_v19 = vpack.c.bf16 %v936_v4, %v936_v4 }
 0x228   : > { %v1083_v10 = vpack.c.bf16 %v1075_v3, %v1075_v3  ;;  %v975_v15 = vunpack.c.l.bf16 %v967_v43  ;;  %v1006_v12 = vmul.f32 0.796875, %v998_v0 }
 0x229   : > { %v921_v16 = vpack.c.bf16 %v913_v8, %v913_v8  ;;  %v1044_v20 = vunpack.c.l.bf16 %v1036_v11  ;;  %v952_v23 = vunpack.c.l.bf16 %v944_v19 }
 0x22a   : > { %v1091_v17 = vunpack.c.l.bf16 %v1083_v10  ;;  %v983_v22 = vadd.f32 %v975_v15, %v2487_v6  ;;  %v1014_v26 = vpack.c.bf16 %v1006_v12, %v1006_v12 }
 0x22b   : > { %v929_v24 = vunpack.c.l.bf16 %v921_v16  ;;  %v1934_v28 = vpop.eup %1933  ;;  %v1052_v5 = vadd.f32 1.0, %v1044_v20  ;;  %v960_v31 = vmul.f32 0.044677734, %v952_v23 }
 0x22c   : > { %v1099_v29 = vmul.f32 %v1091_v17, %v2437_v13  ;;  %v991_v30 = vpack.c.bf16 %v983_v22, %v983_v22  ;;  %v1037_v32 = vpack.c.bf16 %v1934_v28, %v1934_v28  ;;  %v1022_v33 = vunpack.c.l.bf16 %v1014_v26 }
 0x22d   : > { %v937_v34 = vmul.f32 %v929_v24, %v2506_v63  ;;  %v1060_v35 = vpack.c.bf16 %v1052_v5, %v1052_v5  ;;  %v968_v38 = vpack.c.bf16 %v960_v31, %v960_v31 }
 0x22e   : > { %v1106_v18 = vpack.c.bf16 %v1099_v29, %v1098_v25  ;;  %v999_v36 = vunpack.c.l.bf16 %v991_v30  ;;  %v1045_v40 = vunpack.c.l.bf16 %v1037_v32  ;;  %1935 = vtanh.f32 %v1022_v33 }
 0x22f   : > { %v945_v41 = vpack.c.bf16 %v937_v34, %v937_v34  ;;  %v1068_v56 = vunpack.c.l.bf16 %v1060_v35  ;;  %v976_v45 = vunpack.c.l.bf16 %v968_v38 }
 0x230   : > { %1727 = vmatmul.msk.bf16.vlgmr.msrb.gmra.mxu3 %vm614_vm0, %v1106_v18  ;;  %v1007_v44 = vmul.f32 0.796875, %v999_v36  ;;  %v1053_v13 = vadd.f32 1.0, %v1045_v40 }
 0x231   : > { %v953_v46 = vunpack.c.l.bf16 %v945_v41  ;;  %v1076_v47 = vmul.f32 0.5, %v1068_v56  ;;  %v984_v48 = vadd.f32 %v976_v45, %v2499_v42 }
 0x232   : > { %v1015_v14 = vpack.c.bf16 %v1007_v44, %v1007_v44  ;;  %v1061_v49 = vpack.c.bf16 %v1053_v13, %v1053_v13 }
 0x233   : > { %v961_v21 = vmul.f32 0.044677734, %v953_v46  ;;  %v992_v51 = vpack.c.bf16 %v984_v48, %v984_v48  ;;  %v1084_v54 = vpack.c.bf16 %v1076_v47, %v1076_v47 }
 0x234   : > { %v1023_v7 = vunpack.c.l.bf16 %v1015_v14  ;;  %v1936_v52 = vpop.eup %1935  ;;  %v1069_v53 = vunpack.c.l.bf16 %v1061_v49 }
 0x235   : > { %v969_v55 = vpack.c.bf16 %v961_v21, %v961_v21  ;;  %v1038_v57 = vpack.c.bf16 %v1936_v52, %v1936_v52  ;;  %v1000_v58 = vunpack.c.l.bf16 %v992_v51  ;;  %v1092_v2 = vunpack.c.l.bf16 %v1084_v54 }
 0x236   : > { %1937 = vtanh.f32 %v1023_v7  ;;  %v1077_v39 = vmul.f32 0.5, %v1069_v53 }
 0x237   : > { %v977_v59 = vunpack.c.l.bf16 %v969_v55  ;;  %v1046_v60 = vunpack.c.l.bf16 %v1038_v57  ;;  %v1008_v61 = vmul.f32 0.796875, %v1000_v58  ;;  %v1100_v11 = vmul.f32 %v1092_v2, %v2449_v37 }
 0x238   : > { %v1085_v62 = vpack.c.bf16 %v1077_v39, %v1077_v39 }
 0x239   : > { %v985_v3 = vadd.f32 %v977_v59, %v2506_v63  ;;  %v1054_v43 = vadd.f32 1.0, %v1046_v60  ;;  %v1016_v4 = vpack.c.bf16 %v1008_v61, %v1008_v61 }
 0x23a   : > { %v1093_v50 = vunpack.c.l.bf16 %v1085_v62 }
 0x23b   : > { %v993_v8 = vpack.c.bf16 %v985_v3, %v985_v3  ;;  %v1062_v0 = vpack.c.bf16 %v1054_v43, %v1054_v43  ;;  %v1024_v10 = vunpack.c.l.bf16 %v1016_v4 }
 0x23c   : > { %v1938_v9 = vpop.eup %1937  ;;  %v1101_v15 = vmul.f32 %v1093_v50, %v2461_v1 }
 0x23d   : > { %v1039_v19 = vpack.c.bf16 %v1938_v9, %v1938_v9  ;;  %v1001_v16 = vunpack.c.l.bf16 %v993_v8  ;;  %v1070_v12 = vunpack.c.l.bf16 %v1062_v0  ;;  %1939 = vtanh.f32 %v1024_v10 }
 0x23e   : > { %v1107_v17 = vpack.c.bf16 %v1101_v15, %v1100_v11 }
 0x23f   : > { %v1047_v20 = vunpack.c.l.bf16 %v1039_v19  ;;  %v1009_v22 = vmul.f32 0.796875, %v1001_v16  ;;  %v1078_v24 = vmul.f32 0.5, %v1070_v12 }
 0x240   : > { %1728 = vmatmul.msk.bf16.gmra.mxu3 %vm614_vm0, %v1107_v17 }
 0x241   : > { %v1055_v23 = vadd.f32 1.0, %v1047_v20  ;;  %v1017_v25 = vpack.c.bf16 %v1009_v22, %v1009_v22  ;;  %v1086_v30 = vpack.c.bf16 %v1078_v24, %v1078_v24 }
 0x243   : > { %v1063_v26 = vpack.c.bf16 %v1055_v23, %v1055_v23  ;;  %v1025_v28 = vunpack.c.l.bf16 %v1017_v25  ;;  %v1940_v29 = vpop.eup %1939  ;;  %v1094_v33 = vunpack.c.l.bf16 %v1086_v30 }
 0x244   : > { %v1040_v37 = vpack.c.bf16 %v1940_v29, %v1940_v29 }
 0x245   : > { %v1071_v5 = vunpack.c.l.bf16 %v1063_v26  ;;  %1941 = vtanh.f32 %v1025_v28  ;;  %v1102_v40 = vmul.f32 %v1094_v33, %v2476_v27 }
 0x246   : > { %v1048_v31 = vunpack.c.l.bf16 %v1040_v37 }
 0x247   : > { %v1079_v1 = vmul.f32 0.5, %v1071_v5  ;;  %v1765_v5 = vld [vmem:[%s2548_s18 + $0x18] sm:$0xff] }
 0x248   : > { %v1056_v34 = vadd.f32 1.0, %v1048_v31  ;;  %1440 = vmatpush.bf16.msrb.mxu0 %v1765_v5 }
 0x249   : > { %v1087_v32 = vpack.c.bf16 %v1079_v1, %v1079_v1 }
 0x24a   : > { %v1064_v36 = vpack.c.bf16 %v1056_v34, %v1056_v34 }
 0x24b   : > { %v1942_v18 = vpop.eup %1941  ;;  %v1095_v35 = vunpack.c.l.bf16 %v1087_v32 }
 0x24c   : > { %v1041_v38 = vpack.c.bf16 %v1942_v18, %v1942_v18  ;;  %v1072_v56 = vunpack.c.l.bf16 %v1064_v36 }
 0x24d   : > { %v1103_v41 = vmul.f32 %v1095_v35, %v2487_v6  ;;  %v2527_v6 = vld [vmem:[#allocation12] ss:$0 sm:$0xff] }
 0x24e   : > { %v1049_v44 = vunpack.c.l.bf16 %v1041_v38  ;;  %v1080_v46 = vmul.f32 0.5, %v1072_v56  ;;  %v1764_v35 = vld [vmem:[%s2548_s18 + $0x10] sm:$0xff] }
 0x24f   : > { %v1108_v45 = vpack.c.bf16 %v1103_v41, %v1102_v40  ;;  %1441 = vmatpush.bf16.msrb.mxu0 %v1764_v35 }
 0x250   : > { %v1057_v13 = vadd.f32 1.0, %v1049_v44  ;;  %v1088_v48 = vpack.c.bf16 %v1080_v46, %v1080_v46 }
 0x251   : > { %1729 = vmatmul.msk.bf16.gmra.mxu3 %vm614_vm0, %v1108_v45 }
 0x252   : > { %v1065_v47 = vpack.c.bf16 %v1057_v13, %v1057_v13  ;;  %v1096_v7 = vunpack.c.l.bf16 %v1088_v48 }
 0x254   : > { %v1073_v14 = vunpack.c.l.bf16 %v1065_v47  ;;  %v1104_v52 = vmul.f32 %v1096_v7, %v2499_v42 }
 0x256   : > { %v1081_v49 = vmul.f32 0.5, %v1073_v14  ;;  %v1763_v14 = vld [vmem:[%s2548_s18 + $0x8] sm:$0xff] }
 0x257   : > { %1442 = vmatpush.bf16.msrb.mxu0 %v1763_v14 }
 0x258   : > { %v1089_v21 = vpack.c.bf16 %v1081_v49, %v1081_v49 }
 0x25a   : > { %v1097_v51 = vunpack.c.l.bf16 %v1089_v21 }
 0x25c   : > { %v1105_v27 = vmul.f32 %v1097_v51, %v2506_v63 }
 0x25e   : > { %v1109_v53 = vpack.c.bf16 %v1105_v27, %v1104_v52 }
 0x261   : > { %1730 = vmatmul.msk.bf16.gmra.mxu3 %vm614_vm0, %v1109_v53  ;;  %vm1423_vm0 = vcmask 523264  }
 0x2b3   : > { %v1151_v54 = vpop.f32.mrf.mxu3 }
 0x2b4   : > { %v1152_v55 = vadd.f32 %v2527_v6, %v1151_v54  ;;  %v1762_v54 = vld [vmem:[%s2548_s18] sm:$0xff] }
 0x2b5   : > { %1443 = vmatpush.bf16.msrb.mxu0 %v1762_v54 }
 0x2b6   : > { %v1171_v57 = vpack.c.bf16 %v1152_v55, %v1152_v55 }
 0x2b8   : > { %v2530_v58 = vunpack.c.l.bf16 %v1171_v57 }
 0x2ba   : > { %v1187_v39 = vmul.f32 %v2530_v58, %v2530_v58 }
 0x2bb   : > { %v1153_v59 = vpop.f32.mrf.mxu3 }
 0x2bc   : > { %v1195_v60 = vpack.c.bf16 %v1187_v39, %v1187_v39  ;;  %v1154_v42 = vadd.f32 %v2527_v6, %v1153_v59 }
 0x2be   : > { %v1203_v61 = vunpack.c.l.bf16 %v1195_v60  ;;  %v1172_v63 = vpack.c.bf16 %v1154_v42, %v1154_v42 }
 0x2c0   : > { %v1211_v62 = vmul.f32 %v1203_v61, %v2530_v58  ;;  %v2536_v2 = vunpack.c.l.bf16 %v1172_v63 }
 0x2c2   : > { %v1219_v3 = vpack.c.bf16 %v1211_v62, %v1211_v62  ;;  %v1188_v43 = vmul.f32 %v2536_v2, %v2536_v2 }
 0x2c3   : > { %v1156_v8 = vpop.f32.mrf.mxu3 }
 0x2c4   : > { %v1227_v4 = vunpack.c.l.bf16 %v1219_v3  ;;  %v1196_v50 = vpack.c.bf16 %v1188_v43, %v1188_v43  ;;  %v1157_v9 = vadd.f32 %v2527_v6, %v1156_v8 }
 0x2c6   : > { %v1235_v0 = vmul.f32 0.044677734, %v1227_v4  ;;  %v1204_v10 = vunpack.c.l.bf16 %v1196_v50  ;;  %v1173_v11 = vpack.c.bf16 %v1157_v9, %v1157_v9 }
 0x2c8   : > { %v1243_v15 = vpack.c.bf16 %v1235_v0, %v1235_v0  ;;  %v1212_v19 = vmul.f32 %v1204_v10, %v2536_v2  ;;  %v2542_v16 = vunpack.c.l.bf16 %v1173_v11 }
 0x2ca   : > { %v1251_v12 = vunpack.c.l.bf16 %v1243_v15  ;;  %v1220_v17 = vpack.c.bf16 %v1212_v19, %v1212_v19  ;;  %v1189_v20 = vmul.f32 %v2542_v16, %v2542_v16 }
 0x2cb   : > { %v1158_v24 = vpop.f32.mrf.mxu3 }
 0x2cc   : > { %v1259_v22 = vadd.f32 %v1251_v12, %v2530_v58  ;;  %v1228_v23 = vunpack.c.l.bf16 %v1220_v17  ;;  %v1197_v25 = vpack.c.bf16 %v1189_v20, %v1189_v20  ;;  %v1159_v26 = vadd.f32 %v2527_v6, %v1158_v24 }
 0x2ce   : > { %v1267_v28 = vpack.c.bf16 %v1259_v22, %v1259_v22  ;;  %v1236_v29 = vmul.f32 0.044677734, %v1228_v23  ;;  %v1205_v30 = vunpack.c.l.bf16 %v1197_v25  ;;  %v1174_v37 = vpack.c.bf16 %v1159_v26, %v1159_v26 }
 0x2d0   : > { %v1275_v1 = vunpack.c.l.bf16 %v1267_v28  ;;  %v1244_v31 = vpack.c.bf16 %v1236_v29, %v1236_v29  ;;  %v1213_v32 = vmul.f32 %v1205_v30, %v2542_v16  ;;  %v2556_v33 = vunpack.c.l.bf16 %v1174_v37 }
 0x2d2   : > { %v1283_v34 = vmul.f32 0.796875, %v1275_v1  ;;  %v1252_v18 = vunpack.c.l.bf16 %v1244_v31  ;;  %v1221_v36 = vpack.c.bf16 %v1213_v32, %v1213_v32  ;;  %v1190_v38 = vmul.f32 %v2556_v33, %v2556_v33 }
 0x2d4   : > { %v1291_v40 = vpack.c.bf16 %v1283_v34, %v1283_v34  ;;  %v1260_v41 = vadd.f32 %v1252_v18, %v2536_v2  ;;  %v1161_v56 = vpop.f32.mrf.mxu3  ;;  %v1229_v44 = vunpack.c.l.bf16 %v1221_v36  ;;  %v1198_v45 = vpack.c.bf16 %v1190_v38, %v1190_v38 }
 0x2d5   : > { %v1162_v13 = vadd.f32 %v2527_v6, %v1161_v56 }
 0x2d6   : > { %v1299_v46 = vunpack.c.l.bf16 %v1291_v40  ;;  %v1268_v47 = vpack.c.bf16 %v1260_v41, %v1260_v41  ;;  %v1237_v48 = vmul.f32 0.044677734, %v1229_v44  ;;  %v1206_v49 = vunpack.c.l.bf16 %v1198_v45 }
 0x2d7   : > { %v1175_v21 = vpack.c.bf16 %v1162_v13, %v1162_v13 }
 0x2d8   : > { %1943 = vtanh.f32 %v1299_v46  ;;  %v1276_v7 = vunpack.c.l.bf16 %v1268_v47  ;;  %v1245_v51 = vpack.c.bf16 %v1237_v48, %v1237_v48  ;;  %v1214_v52 = vmul.f32 %v1206_v49, %v2556_v33 }
 0x2d9   : > { %v2565_v27 = vunpack.c.l.bf16 %v1175_v21 }
 0x2da   : > { %v1284_v53 = vmul.f32 0.796875, %v1276_v7  ;;  %v1253_v55 = vunpack.c.l.bf16 %v1245_v51  ;;  %v1222_v57 = vpack.c.bf16 %v1214_v52, %v1214_v52 }
 0x2db   : > { %v1191_v39 = vmul.f32 %v2565_v27, %v2565_v27 }
 0x2dc   : > { %v1292_v59 = vpack.c.bf16 %v1284_v53, %v1284_v53  ;;  %v1163_v60 = vpop.f32.mrf.mxu3  ;;  %v1261_v42 = vadd.f32 %v1253_v55, %v2542_v16  ;;  %v1230_v61 = vunpack.c.l.bf16 %v1222_v57 }
 0x2dd   : > { %v1199_v63 = vpack.c.bf16 %v1191_v39, %v1191_v39  ;;  %v1164_v62 = vadd.f32 %v2527_v6, %v1163_v60 }
 0x2de   : > { %v1944_v3 = vpop.eup %1943  ;;  %v1300_v43 = vunpack.c.l.bf16 %v1292_v59  ;;  %v1269_v50 = vpack.c.bf16 %v1261_v42, %v1261_v42  ;;  %v1238_v8 = vmul.f32 0.044677734, %v1230_v61 }
 0x2df   : > { %v1315_v4 = vpack.c.bf16 %v1944_v3, %v1944_v3  ;;  %v1207_v9 = vunpack.c.l.bf16 %v1199_v63  ;;  %v1176_v0 = vpack.c.bf16 %v1164_v62, %v1164_v62 }
 0x2e0   : > { %1945 = vtanh.f32 %v1300_v43  ;;  %v1277_v10 = vunpack.c.l.bf16 %v1269_v50  ;;  %v1246_v11 = vpack.c.bf16 %v1238_v8, %v1238_v8 }
 0x2e1   : > { %v1215_v15 = vmul.f32 %v1207_v9, %v2565_v27  ;;  %v1323_v19 = vunpack.c.l.bf16 %v1315_v4  ;;  %v2573_v12 = vunpack.c.l.bf16 %v1176_v0 }
 0x2e2   : > { %v1285_v17 = vmul.f32 0.796875, %v1277_v10  ;;  %v1254_v20 = vunpack.c.l.bf16 %v1246_v11 }
 0x2e3   : > { %v1223_v22 = vpack.c.bf16 %v1215_v15, %v1215_v15  ;;  %v1331_v23 = vadd.f32 1.0, %v1323_v19  ;;  %v1192_v24 = vmul.f32 %v2573_v12, %v2573_v12 }
 0x2e4   : > { %v1166_v25 = vpop.f32.mrf.mxu3  ;;  %v1293_v26 = vpack.c.bf16 %v1285_v17, %v1285_v17  ;;  %v1262_v28 = vadd.f32 %v1254_v20, %v2556_v33 }
 0x2e5   : > { %v1231_v29 = vunpack.c.l.bf16 %v1223_v22  ;;  %v1167_v5 = vadd.f32 %v2527_v6, %v1166_v25  ;;  %v1200_v37 = vpack.c.bf16 %v1192_v24, %v1192_v24  ;;  %v1339_v1 = vpack.c.bf16 %v1331_v23, %v1331_v23 }
 0x2e6   : > { %v1946_v30 = vpop.eup %1945  ;;  %v1301_v32 = vunpack.c.l.bf16 %v1293_v26  ;;  %v1270_v34 = vpack.c.bf16 %v1262_v28, %v1262_v28 }
 0x2e7   : > { %v1316_v31 = vpack.c.bf16 %v1946_v30, %v1946_v30  ;;  %v1239_v18 = vmul.f32 0.044677734, %v1231_v29  ;;  %v1208_v35 = vunpack.c.l.bf16 %v1200_v37  ;;  %v1177_v36 = vpack.c.bf16 %v1167_v5, %v1167_v5 }
 0x2e8   : > { %v1347_v38 = vunpack.c.l.bf16 %v1339_v1  ;;  %1947 = vtanh.f32 %v1301_v32  ;;  %v1278_v40 = vunpack.c.l.bf16 %v1270_v34 }
 0x2e9   : > { %v1247_v41 = vpack.c.bf16 %v1239_v18, %v1239_v18  ;;  %v1324_v56 = vunpack.c.l.bf16 %v1316_v31  ;;  %v1216_v44 = vmul.f32 %v1208_v35, %v2573_v12  ;;  %v2580_v45 = vunpack.c.l.bf16 %v1177_v36 }
 0x2ea   : > { %v1355_v13 = vmul.f32 0.5, %v1347_v38  ;;  %v1286_v46 = vmul.f32 0.796875, %v1278_v40 }
 0x2eb   : > { %v1255_v47 = vunpack.c.l.bf16 %v1247_v41  ;;  %v1332_v14 = vadd.f32 1.0, %v1324_v56  ;;  %v1224_v48 = vpack.c.bf16 %v1216_v44, %v1216_v44  ;;  %v1193_v49 = vmul.f32 %v2580_v45, %v2580_v45 }
 0x2ec   : > { %v1168_v21 = vpop.f32.mrf.mxu3  ;;  %v1294_v7 = vpack.c.bf16 %v1286_v46, %v1286_v46  ;;  %v1363_v57 = vpack.c.bf16 %v1355_v13, %v1355_v13 }
 0x2ed   : > { %v1263_v51 = vadd.f32 %v1255_v47, %v2565_v27  ;;  %v1169_v52 = vadd.f32 %v2527_v6, %v1168_v21  ;;  %v1340_v53 = vpack.c.bf16 %v1332_v14, %v1332_v14  ;;  %v1232_v54 = vunpack.c.l.bf16 %v1224_v48 }
 0x2ee   : > { %v1201_v55 = vpack.c.bf16 %v1193_v49, %v1193_v49  ;;  %v1948_v39 = vpop.eup %1947  ;;  %v1302_v59 = vunpack.c.l.bf16 %v1294_v7  ;;  %v1371_v15 = vunpack.c.l.bf16 %v1363_v57 }
 0x2ef   : > { %v1271_v60 = vpack.c.bf16 %v1263_v51, %v1263_v51  ;;  %v1178_v42 = vpack.c.bf16 %v1169_v52, %v1169_v52  ;;  %v1348_v61 = vunpack.c.l.bf16 %v1340_v53  ;;  %v1240_v63 = vmul.f32 0.044677734, %v1232_v54 }
 0x2f0   : > { %v1209_v62 = vunpack.c.l.bf16 %v1201_v55  ;;  %v1317_v3 = vpack.c.bf16 %v1948_v39, %v1948_v39  ;;  %1949 = vtanh.f32 %v1302_v59  ;;  %v1379_v37 = vmul.f32 %v1371_v15, %v2530_v58 }
 0x2f1   : > { %v1279_v43 = vunpack.c.l.bf16 %v1271_v60  ;;  %v2586_v4 = vunpack.c.l.bf16 %v1178_v42  ;;  %v1356_v50 = vmul.f32 0.5, %v1348_v61  ;;  %v1248_v8 = vpack.c.bf16 %v1240_v63, %v1240_v63 }
 0x2f2   : > { %v1217_v6 = vmul.f32 %v1209_v62, %v2580_v45  ;;  %v1325_v9 = vunpack.c.l.bf16 %v1317_v3 }
 0x2f3   : > { %v1287_v0 = vmul.f32 0.796875, %v1279_v43  ;;  %v1194_v10 = vmul.f32 %v2586_v4, %v2586_v4  ;;  %v1364_v11 = vpack.c.bf16 %v1356_v50, %v1356_v50  ;;  %v1256_v19 = vunpack.c.l.bf16 %v1248_v8 }
 0x2f4   : > { %v1225_v17 = vpack.c.bf16 %v1217_v6, %v1217_v6  ;;  %v1333_v20 = vadd.f32 1.0, %v1325_v9 }
 0x2f5   : > { %v1295_v22 = vpack.c.bf16 %v1287_v0, %v1287_v0  ;;  %v1202_v23 = vpack.c.bf16 %v1194_v10, %v1194_v10  ;;  %v1372_v24 = vunpack.c.l.bf16 %v1364_v11  ;;  %v1264_v25 = vadd.f32 %v1256_v19, %v2573_v12 }
 0x2f6   : > { %v1233_v26 = vunpack.c.l.bf16 %v1225_v17  ;;  %v1341_v28 = vpack.c.bf16 %v1333_v20, %v1333_v20  ;;  %v1950_v29 = vpop.eup %1949 }
 0x2f7   : > { %v1303_v5 = vunpack.c.l.bf16 %v1295_v22  ;;  %v1210_v30 = vunpack.c.l.bf16 %v1202_v23  ;;  %v1380_v1 = vmul.f32 %v1372_v24, %v2536_v2  ;;  %v1272_v31 = vpack.c.bf16 %v1264_v25, %v1264_v25 }
 0x2f8   : > { %v1241_v32 = vmul.f32 0.044677734, %v1233_v26  ;;  %v1318_v34 = vpack.c.bf16 %v1950_v29, %v1950_v29  ;;  %v1349_v18 = vunpack.c.l.bf16 %v1341_v28 }
 0x2f9   : > { %1951 = vtanh.f32 %v1303_v5  ;;  %v1218_v35 = vmul.f32 %v1210_v30, %v2586_v4  ;;  %v1387_v36 = vpack.c.bf16 %v1380_v1, %v1379_v37  ;;  %v1280_v38 = vunpack.c.l.bf16 %v1272_v31 }
 0x2fa   : > { %v1249_v40 = vpack.c.bf16 %v1241_v32, %v1241_v32  ;;  %v1326_v41 = vunpack.c.l.bf16 %v1318_v34  ;;  %v1357_v58 = vmul.f32 0.5, %v1349_v18 }
 0x2fb   : > { %v1226_v56 = vpack.c.bf16 %v1218_v35, %v1218_v35  ;;  %1747 = vmatmul.msk.bf16.vlgmr.msrb.gmra.mxu0 %vm1423_vm0, %v1387_v36  ;;  %v1288_v44 = vmul.f32 0.796875, %v1280_v38 }
 0x2fc   : > { %v1257_v13 = vunpack.c.l.bf16 %v1249_v40  ;;  %v1334_v46 = vadd.f32 1.0, %v1326_v41  ;;  %v1365_v53 = vpack.c.bf16 %v1357_v58, %v1357_v58 }
 0x2fd   : > { %v1234_v47 = vunpack.c.l.bf16 %v1226_v56  ;;  %v1296_v2 = vpack.c.bf16 %v1288_v44, %v1288_v44 }
 0x2fe   : > { %v1265_v14 = vadd.f32 %v1257_v13, %v2580_v45  ;;  %v1342_v48 = vpack.c.bf16 %v1334_v46, %v1334_v46  ;;  %v1373_v63 = vunpack.c.l.bf16 %v1365_v53 }
 0x2ff   : > { %v1952_v49 = vpop.eup %1951  ;;  %v1242_v21 = vmul.f32 0.044677734, %v1234_v47  ;;  %v1304_v7 = vunpack.c.l.bf16 %v1296_v2 }
 0x300   : > { %v1273_v51 = vpack.c.bf16 %v1265_v14, %v1265_v14  ;;  %v1350_v52 = vunpack.c.l.bf16 %v1342_v48  ;;  %v1319_v55 = vpack.c.bf16 %v1952_v49, %v1952_v49  ;;  %v1381_v10 = vmul.f32 %v1373_v63, %v2542_v16 }
 0x301   : > { %v1250_v54 = vpack.c.bf16 %v1242_v21, %v1242_v21  ;;  %1953 = vtanh.f32 %v1304_v7 }
 0x302   : > { %v1281_v57 = vunpack.c.l.bf16 %v1273_v51  ;;  %v1358_v39 = vmul.f32 0.5, %v1350_v52  ;;  %v1327_v60 = vunpack.c.l.bf16 %v1319_v55 }
 0x303   : > { %v1258_v59 = vunpack.c.l.bf16 %v1250_v54 }
 0x304   : > { %v1289_v42 = vmul.f32 0.796875, %v1281_v57  ;;  %v1366_v61 = vpack.c.bf16 %v1358_v39, %v1358_v39  ;;  %v1335_v3 = vadd.f32 1.0, %v1327_v60 }
 0x305   : > { %v1266_v62 = vadd.f32 %v1258_v59, %v2586_v4 }
 0x306   : > { %v1297_v43 = vpack.c.bf16 %v1289_v42, %v1289_v42  ;;  %v1374_v50 = vunpack.c.l.bf16 %v1366_v61  ;;  %v1343_v6 = vpack.c.bf16 %v1335_v3, %v1335_v3 }
 0x307   : > { %v1274_v8 = vpack.c.bf16 %v1266_v62, %v1266_v62  ;;  %v1954_v9 = vpop.eup %1953 }
 0x308   : > { %v1305_v0 = vunpack.c.l.bf16 %v1297_v43  ;;  %v1382_v11 = vmul.f32 %v1374_v50, %v2556_v33  ;;  %v1320_v19 = vpack.c.bf16 %v1954_v9, %v1954_v9  ;;  %v1351_v17 = vunpack.c.l.bf16 %v1343_v6 }
 0x309   : > { %v1282_v15 = vunpack.c.l.bf16 %v1274_v8 }
 0x30a   : > { %1955 = vtanh.f32 %v1305_v0  ;;  %v1388_v20 = vpack.c.bf16 %v1382_v11, %v1381_v10  ;;  %v1328_v23 = vunpack.c.l.bf16 %v1320_v19  ;;  %v1359_v26 = vmul.f32 0.5, %v1351_v17 }
 0x30b   : > { %v1290_v22 = vmul.f32 0.796875, %v1282_v15 }
 0x30c   : > { %1748 = vmatmul.msk.bf16.gmra.mxu0 %vm1423_vm0, %v1388_v20  ;;  %v1336_v25 = vadd.f32 1.0, %v1328_v23  ;;  %v1367_v16 = vpack.c.bf16 %v1359_v26, %v1359_v26 }
 0x30d   : > { %v1298_v24 = vpack.c.bf16 %v1290_v22, %v1290_v22 }
 0x30e   : > { %v1344_v29 = vpack.c.bf16 %v1336_v25, %v1336_v25  ;;  %v1375_v32 = vunpack.c.l.bf16 %v1367_v16 }
 0x30f   : > { %v1306_v28 = vunpack.c.l.bf16 %v1298_v24 }
 0x310   : > { %v1956_v5 = vpop.eup %1955  ;;  %v1352_v30 = vunpack.c.l.bf16 %v1344_v29  ;;  %v1383_v40 = vmul.f32 %v1375_v32, %v2565_v27 }
 0x311   : > { %1957 = vtanh.f32 %v1306_v28  ;;  %v1321_v37 = vpack.c.bf16 %v1956_v5, %v1956_v5 }
 0x312   : > { %v1360_v33 = vmul.f32 0.5, %v1352_v30 }
 0x313   : > { %v1329_v1 = vunpack.c.l.bf16 %v1321_v37 }
 0x314   : > { %v1368_v31 = vpack.c.bf16 %v1360_v33, %v1360_v33 }
 0x315   : > { %v1337_v34 = vadd.f32 1.0, %v1329_v1 }
 0x316   : > { %v1376_v35 = vunpack.c.l.bf16 %v1368_v31 }
 0x317   : > { %v1958_v18 = vpop.eup %1957  ;;  %v1345_v36 = vpack.c.bf16 %v1337_v34, %v1337_v34 }
 0x318   : > { %v1322_v38 = vpack.c.bf16 %v1958_v18, %v1958_v18  ;;  %v1384_v41 = vmul.f32 %v1376_v35, %v2573_v12 }
 0x319   : > { %v1353_v56 = vunpack.c.l.bf16 %v1345_v36 }
 0x31a   : > { %v1330_v44 = vunpack.c.l.bf16 %v1322_v38  ;;  %v1389_v13 = vpack.c.bf16 %v1384_v41, %v1383_v40 }
 0x31b   : > { %v1361_v58 = vmul.f32 0.5, %v1353_v56 }
 0x31c   : > { %v1338_v46 = vadd.f32 1.0, %v1330_v44  ;;  %1749 = vmatmul.msk.bf16.gmra.mxu0 %vm1423_vm0, %v1389_v13 }
 0x31d   : > { %v1369_v14 = vpack.c.bf16 %v1361_v58, %v1361_v58 }
 0x31e   : > { %v1346_v47 = vpack.c.bf16 %v1338_v46, %v1338_v46 }
 0x31f   : > { %v1377_v21 = vunpack.c.l.bf16 %v1369_v14 }
 0x320   : > { %v1354_v2 = vunpack.c.l.bf16 %v1346_v47 }
 0x321   : > { %v1385_v51 = vmul.f32 %v1377_v21, %v2580_v45 }
 0x322   : > { %v1362_v48 = vmul.f32 0.5, %v1354_v2 }
 0x324   : > { %v1370_v49 = vpack.c.bf16 %v1362_v48, %v1362_v48 }
 0x326   : > { %v1378_v7 = vunpack.c.l.bf16 %v1370_v49 }
 0x328   : > { %v1386_v27 = vmul.f32 %v1378_v7, %v2586_v4 }
 0x32a   : > { %v1390_v12 = vpack.c.bf16 %v1386_v27, %v1385_v51 }
 0x32c   : > { %1750 = vmatmul.msk.bf16.gmra.mxu0 %vm1423_vm0, %v1390_v12 }
 0x378   : > { %v1445_v52 = vpop.f32.mrf.mxu0 }
 0x379   : > { %v1465_v53 = vpack.c.bf16 %v1445_v52, %v1445_v52 }
 0x37b   : > { %1474 = vst.msk [vmem:[%s547_s30] sm:$0xf] %vm1473_vm10, %v1465_v53 }
 0x380   : > { %v1447_v54 = vpop.f32.mrf.mxu0 }
 0x381   : > { %v1466_v55 = vpack.c.bf16 %v1447_v54, %v1447_v54 }
 0x383   : > { %1475 = vst.msk [vmem:[%s547_s30 + $0x4] sm:$0xf] %vm1473_vm10, %v1466_v55 }
 0x389   : > { %v1450_v57 = vpop.f32.mrf.mxu0 }
 0x38a   : > { %v1467_v45 = vpack.c.bf16 %v1450_v57, %v1450_v57 }
 0x38c   : > { %1476 = vst.msk [vmem:[%s547_s30 + $0x8] sm:$0xf] %vm1473_vm10, %v1467_v45 }
 0x391   : > { %v1452_v4 = vpop.f32.mrf.mxu0 }
 0x392   : > { %v1468_v39 = vpack.c.bf16 %v1452_v4, %v1452_v4 }
 0x394   : > { %1477 = vst.msk [vmem:[%s547_s30 + $0xc] sm:$0xf] %vm1473_vm10, %v1468_v39 }
 0x399   : > { %v1455_v59 = vpop.f32.mrf.mxu0 }
 0x39a   : > { %v1469_v60 = vpack.c.bf16 %v1455_v59, %v1455_v59 }
 0x39c   : > { %1478 = vst.msk [vmem:[%s547_s30 + $0x10] sm:$0xf] %vm1473_vm10, %v1469_v60 }
 0x3a1   : > { %v1457_v42 = vpop.f32.mrf.mxu0 }
 0x3a2   : > { %v1470_v61 = vpack.c.bf16 %v1457_v42, %v1457_v42 }
 0x3a4   : > { %1479 = vst.msk [vmem:[%s547_s30 + $0x14] sm:$0xf] %vm1473_vm10, %v1470_v61 }
 0x3a9   : > { %v1460_v63 = vpop.f32.mrf.mxu0 }
 0x3aa   : > { %v1471_v62 = vpack.c.bf16 %v1460_v63, %v1460_v63 }
 0x3ac   : > { %1480 = vst.msk [vmem:[%s547_s30 + $0x18] sm:$0xf] %vm1473_vm10, %v1471_v62 }
 0x3b1   : > { %v1462_v3 = vpop.f32.mrf.mxu0 }
 0x3b2   : > { %v1472_v43 = vpack.c.bf16 %v1462_v3, %v1462_v3 }
 0x3b4   : > { %1481 = vst.msk [vmem:[%s547_s30 + $0x1c] sm:$0xf] %vm1473_vm10, %v1472_v43 }
 0x3b5 PF: > { %s24_s15 = sadd.s32 1, %s2207_s15   ;;  %s2646_s13 = smov %s2203_s14 }
 0x3b6   : > { %p21_p8 = scmp.ge.s32.totalorder %s24_s15, 4   ;;  %s2647_s14 = smov %s2649_s24 }
 0x3b8   :  { %23 = sbr.rel (!%p21_p8) target bundleno = 8 (0x8), region = 125 }
 0x3bd   :  { %1512 = vsyncpa [#allocation3], 1 }
 0x3be   :  { %1514 = vsyncpa [#allocation3 + $0x1], 1 }
 0x3bf   :  { %1515 = vsyncpa [#allocation5], 1 }
 0x3c0   :  { %1516 = vsyncpa [#allocation8], 1 }
 0x3c1   :  { %1517 = vsyncpa [#allocation11], 1 }

</bundles_post_ra>
